<compile_context>
chip_gen: v6e
topology: v6e:2x2x1
jax: 0.10.0
libtpu: 0.0.40
codegen_flags: <defaults>
</compile_context>

<pallas_src>
import jax
import jax.numpy as jnp
import numpy as np
from jax.experimental import pallas as pl
from jax.experimental.pallas import tpu as pltpu

# ----------------------------- model dims -----------------------------------
VOCAB = 50
VOCAB_PAD = 64    # vocab padded to a multiple of 8 for the one-hot matmul
EMB = 32          # embedding_dim
HID = 32          # hidden_dim
OUT = 4           # output_dim
LAYERS = 2        # n_layers
PAD_IDX = 0
B = 2             # real batch
T = 8             # seq len
B_PAD = 8         # batch padded to a full sublane tile


# ------------------------------ Pallas kernel --------------------------------
def gru_kernel(ids_ref, lens_ref, emb_ref, wih_ref, whh_ref, bi_ref, bhn_ref,
               fcw_ref, fcb_ref, out_ref):
    """Embedding + wavefronted multi-layer GRU recurrence + linear head.

    ids_ref  : (T*Bp, 1)   int32 token ids, time-major, batch padded to 8
    lens_ref : (Bp, 1)     int32 valid lengths (0 for padded rows)
    emb_ref  : (Vp, E)     f32 embedding table (vocab padded)
    wih_ref  : (L, E, 3H)  bf16 fused input->gate weights, gate order r|z|n
    whh_ref  : (L, H, 3H)  bf16 fused hidden->gate weights
    bi_ref   : (L, 1, 3H)  f32 fused input bias (r/z slots include bhh_r/z)
    bhn_ref  : (L, 1, H)   f32 hidden n-gate bias
    fcw_ref  : (H, O)      f32 classifier weight (transposed)
    fcb_ref  : (1, O)      f32 classifier bias
    out_ref  : (Bp, O)     logits
    """
    V, E = emb_ref.shape
    L_, H, H3 = whh_ref.shape
    Bp = lens_ref.shape[0]
    T_ = ids_ref.shape[0] // Bp

    # ---- embedding lookup as a one-hot MXU matmul (hoisted, f32) -----------
    ids = ids_ref[...]                                        # (T*Bp, 1)
    vocab_iota = jax.lax.broadcasted_iota(jnp.int32, (1, V), 1)
    onehot = (ids == vocab_iota).astype(jnp.float32)          # (T*Bp, V)
    x_flat = jnp.dot(onehot, emb_ref[...],
                     preferred_element_type=jnp.float32)      # (T*Bp, E)

    # per-layer fused weights / biases, loaded once (register-resident)
    wih = [wih_ref[l] for l in range(L_)]                     # (E, 3H) bf16
    whh = [whh_ref[l] for l in range(L_)]                     # (H, 3H) bf16
    bi = [bi_ref[l] for l in range(L_)]                       # (1, 3H) f32
    bhn = [bhn_ref[l] for l in range(L_)]                     # (1, H)  f32

    # ---- hoisted layer-0 input projection: one batched fused matmul --------
    gi0 = (jnp.dot(x_flat.astype(jnp.bfloat16), wih[0],
                   preferred_element_type=jnp.float32)
           + bi[0]).reshape(T_, Bp, H3)                       # (T, Bp, 3H)

    # packed-sequence freeze masks (independent of the recurrent chain)
    lens = lens_ref[...]                                      # (Bp, 1) int32
    masks = [lens > t for t in range(T_)]                     # (Bp, 1) bool

    def gru_cell(h, gi_t, whh_l, bhn_l):
        # Single fused hidden projection on the serial chain (bf16 MXU).
        gh = jnp.dot(h.astype(jnp.bfloat16), whh_l,
                     preferred_element_type=jnp.float32)      # (Bp, 3H)
        rz = jax.nn.sigmoid(gi_t[:, :2 * H] + gh[:, :2 * H])  # r|z, f32 EUP
        r = rz[:, :H]
        z = rz[:, H:]
        n = jnp.tanh(gi_t[:, 2 * H:] + r * (gh[:, 2 * H:] + bhn_l))
        return (1.0 - z) * n + z * h

    # ---- wavefront over layers: diagonal s runs layer l at t = s - l -------
    h = [jnp.zeros((Bp, H), jnp.float32) for _ in range(L_)]
    out_prev = [None] * L_      # layer l's hidden at its latest completed step
    for s in range(T_ + L_ - 1):          # static unroll (T, L small & fixed)
        out_new = list(out_prev)
        for l in range(L_):
            t = s - l
            if 0 <= t < T_:
                if l == 0:
                    gi_t = gi0[t]
                else:
                    # layer l consumes layer l-1's hidden from the previous
                    # diagonal -> independent of this layer's h chain.
                    gi_t = (jnp.dot(out_prev[l - 1].astype(jnp.bfloat16),
                                    wih[l],
                                    preferred_element_type=jnp.float32)
                            + bi[l])
                h_new = gru_cell(h[l], gi_t, whh[l], bhn[l])
                # packed-sequence semantics: single select on the chain
                h[l] = jnp.where(masks[t], h_new, h[l])
                out_new[l] = h[l]
        out_prev = out_new

    # Top-layer frozen hidden == output at t = length-1; dropout is identity.
    out_ref[...] = (jnp.dot(h[L_ - 1], fcw_ref[...],
                            preferred_element_type=jnp.float32)
                    + fcb_ref[...])


# ------------------------------ wrapper --------------------------------------
@jax.jit
def gru_forward(ids, lengths, p):
    Bn, Tn = ids.shape
    # Only tiny int32 glue remains in the wrapper.
    ids_col = jnp.pad(ids.astype(jnp.int32).T,
                      ((0, 0), (0, B_PAD - Bn)),
                      constant_values=PAD_IDX).reshape(Tn * B_PAD, 1)
    lens = jnp.pad(lengths.astype(jnp.int32),
                   (0, B_PAD - Bn)).reshape(B_PAD, 1)

    vmem = pl.BlockSpec(memory_space=pltpu.MemorySpace.VMEM)
    out = pl.pallas_call(
        gru_kernel,
        out_shape=jax.ShapeDtypeStruct((B_PAD, OUT), jnp.float32),
        in_specs=[vmem] * 9,
        out_specs=vmem,
    )(ids_col, lens, p["emb"], p["wih"], p["whh"], p["bi"], p["bhn"],
      p["fcw"], p["fcb"])
    return out[:Bn]


# ------------------ one-time parameter packing (outside jit) ------------------
def pack_params(raw):
    wih, whh = raw["wih"], raw["whh"]          # (L,3,E,H), (L,3,H,H)
    bih, bhh = raw["bih"], raw["bhh"]          # (L,3,1,H)
    wih_f = jnp.concatenate([wih[:, 0], wih[:, 1], wih[:, 2]], axis=-1)
    whh_f = jnp.concatenate([whh[:, 0], whh[:, 1], whh[:, 2]], axis=-1)
    # r/z hidden biases sit outside the r-gating -> fold into the input bias.
    bi_f = jnp.concatenate([bih[:, 0] + bhh[:, 0],
                            bih[:, 1] + bhh[:, 1],
                            bih[:, 2]], axis=-1)               # (L, 1, 3H)
    emb_p = jnp.pad(raw["embedding"].astype(jnp.float32),
                    ((0, VOCAB_PAD - VOCAB), (0, 0)))
    return {
        "emb": emb_p,
        "wih": wih_f.astype(jnp.bfloat16),
        "whh": whh_f.astype(jnp.bfloat16),
        "bi": bi_f.astype(jnp.float32),
        "bhn": bhh[:, 2].astype(jnp.float32),                  # (L, 1, H)
        "fcw": raw["fcw"].astype(jnp.float32),
        "fcb": raw["fcb"].astype(jnp.float32),
    }


# ------------------------- pure-JAX reference --------------------------------
def gru_reference(ids, lengths, params):
    emb = jnp.take(params["embedding"], ids, axis=0).astype(jnp.float32)
    lens = lengths.astype(jnp.int32)
    seq = emb                                                  # (B, T, E)
    Bn = ids.shape[0]
    h = jnp.zeros((Bn, HID), jnp.float32)
    for layer in range(LAYERS):
        wih, whh = params["wih"][layer], params["whh"][layer]
        bih, bhh = params["bih"][layer], params["bhh"][layer]
        h = jnp.zeros((Bn, HID), jnp.float32)
        outs = []
        for t in range(T):
            x_t = seq[:, t, :]
            r = jax.nn.sigmoid(x_t @ wih[0] + bih[0] + h @ whh[0] + bhh[0])
            z = jax.nn.sigmoid(x_t @ wih[1] + bih[1] + h @ whh[1] + bhh[1])
            n = jnp.tanh(x_t @ wih[2] + bih[2] + r * (h @ whh[2] + bhh[2]))
            h_new = (1.0 - z) * n + z * h
            h = jnp.where((t < lens)[:, None], h_new, h)
            outs.append(h)
        seq = jnp.stack(outs, axis=1)
    return h @ params["fcw"] + params["fcb"]


# ------------------------------ main ------------------------------------------
if __name__ == "__main__":
    key = jax.random.PRNGKey(0)
    k_emb, k_wih, k_whh, k_bih, k_bhh, k_fc, k_ids = jax.random.split(key, 7)

    # Deterministic synthetic parameters (init_weights would zero the biases;
    # small random biases are used here to exercise the full bias path).
    raw = {
        "embedding": jax.random.normal(k_emb, (VOCAB, EMB), jnp.float32) * 0.1,
        "wih": jax.random.normal(k_wih, (LAYERS, 3, EMB, HID), jnp.float32) * 0.1,
        "whh": jax.random.normal(k_whh, (LAYERS, 3, HID, HID), jnp.float32) * 0.1,
        "bih": jax.random.normal(k_bih, (LAYERS, 3, 1, HID), jnp.float32) * 0.05,
        "bhh": jax.random.normal(k_bhh, (LAYERS, 3, 1, HID), jnp.float32) * 0.05,
        "fcw": jax.random.normal(k_fc, (HID, OUT), jnp.float32) * 0.1,
        "fcb": jnp.zeros((1, OUT), jnp.float32),
    }
    packed = pack_params(raw)

    ids = jax.random.randint(k_ids, (B, T), 1, VOCAB, dtype=jnp.int32)
    lengths = jnp.array([T, 5], dtype=jnp.int32)      # per-sequence valid lens
    valid = (jnp.arange(T)[None, :] < lengths[:, None])
    ids = jnp.where(valid, ids, PAD_IDX)              # pad short seq (cosmetic)

    logits = gru_forward(ids, lengths, packed)
    jax.block_until_ready(logits)

    ref = gru_reference(ids, lengths, raw)
    np.testing.assert_allclose(np.asarray(logits), np.asarray(ref),
                               rtol=1e-2, atol=1e-2)
    assert logits.shape == (B, OUT)
    print("KERNEL_OK")
</pallas_src>

<mosaic_0001>
module attributes {stable_mosaic.version = 11 : i64} {
  func.func @gru_kernel(%arg0: memref<64x1xi32, #tpu.memory_space<vmem>>, %arg1: memref<8x1xi32, #tpu.memory_space<vmem>>, %arg2: memref<64x32xf32, #tpu.memory_space<vmem>>, %arg3: memref<2x32x96xbf16, #tpu.memory_space<vmem>>, %arg4: memref<2x32x96xbf16, #tpu.memory_space<vmem>>, %arg5: memref<2x1x96xf32, #tpu.memory_space<vmem>>, %arg6: memref<2x1x32xf32, #tpu.memory_space<vmem>>, %arg7: memref<32x4xf32, #tpu.memory_space<vmem>>, %arg8: memref<1x4xf32, #tpu.memory_space<vmem>>, %arg9: memref<8x4xf32, #tpu.memory_space<vmem>>) attributes {dimension_semantics = [], scalar_prefetch = 0 : i64, scratch_operands = 0 : i64, tpu.core_type = #tpu.core_type<tc>} {
    %c0 = arith.constant 0 : index
    %c0_0 = arith.constant 0 : index
    %0 = vector.load %arg0[%c0, %c0_0] : memref<64x1xi32, #tpu.memory_space<vmem>>, vector<64x1xi32>
    %1 = tpu.iota {dimensions = array<i32: 1>} : vector<1x64xi32>
    %2 = vector.broadcast %0 : vector<64x1xi32> to vector<64x64xi32>
    %3 = vector.broadcast %1 : vector<1x64xi32> to vector<64x64xi32>
    %4 = arith.cmpi eq, %2, %3 : vector<64x64xi32>
    %5 = arith.extui %4 : vector<64x64xi1> to vector<64x64xi32>
    %6 = arith.sitofp %5 : vector<64x64xi32> to vector<64x64xf32>
    %c0_1 = arith.constant 0 : index
    %c0_2 = arith.constant 0 : index
    %7 = vector.load %arg2[%c0_1, %c0_2] : memref<64x32xf32, #tpu.memory_space<vmem>>, vector<64x32xf32>
    %cst = arith.constant dense<0.000000e+00> : vector<64x32xf32>
    %8 = tpu.matmul %6, %7, %cst {dimension_numbers = #tpu.dot_dimension_numbers<[1], [0], [0], [1], [0, 0, 1, 1], [], []>} : vector<64x64xf32>, vector<64x32xf32>, vector<64x32xf32> -> vector<64x32xf32>
    %c0_3 = arith.constant 0 : index
    %c0_4 = arith.constant 0 : index
    %c0_5 = arith.constant 0 : index
    %9 = vector.load %arg3[%c0_3, %c0_4, %c0_5] : memref<2x32x96xbf16, #tpu.memory_space<vmem>>, vector<1x32x96xbf16>
    %10 = vector.shape_cast %9 : vector<1x32x96xbf16> to vector<32x96xbf16>
    %c1 = arith.constant 1 : index
    %c0_6 = arith.constant 0 : index
    %c0_7 = arith.constant 0 : index
    %11 = vector.load %arg3[%c1, %c0_6, %c0_7] : memref<2x32x96xbf16, #tpu.memory_space<vmem>>, vector<1x32x96xbf16>
    %12 = vector.shape_cast %11 : vector<1x32x96xbf16> to vector<32x96xbf16>
    %c0_8 = arith.constant 0 : index
    %c0_9 = arith.constant 0 : index
    %c0_10 = arith.constant 0 : index
    %13 = vector.load %arg4[%c0_8, %c0_9, %c0_10] : memref<2x32x96xbf16, #tpu.memory_space<vmem>>, vector<1x32x96xbf16>
    %14 = vector.shape_cast %13 : vector<1x32x96xbf16> to vector<32x96xbf16>
    %c1_11 = arith.constant 1 : index
    %c0_12 = arith.constant 0 : index
    %c0_13 = arith.constant 0 : index
    %15 = vector.load %arg4[%c1_11, %c0_12, %c0_13] : memref<2x32x96xbf16, #tpu.memory_space<vmem>>, vector<1x32x96xbf16>
    %16 = vector.shape_cast %15 : vector<1x32x96xbf16> to vector<32x96xbf16>
    %c0_14 = arith.constant 0 : index
    %c0_15 = arith.constant 0 : index
    %c0_16 = arith.constant 0 : index
    %17 = vector.load %arg5[%c0_14, %c0_15, %c0_16] : memref<2x1x96xf32, #tpu.memory_space<vmem>>, vector<1x1x96xf32>
    %18 = vector.shape_cast %17 : vector<1x1x96xf32> to vector<1x96xf32>
    %c1_17 = arith.constant 1 : index
    %c0_18 = arith.constant 0 : index
    %c0_19 = arith.constant 0 : index
    %19 = vector.load %arg5[%c1_17, %c0_18, %c0_19] : memref<2x1x96xf32, #tpu.memory_space<vmem>>, vector<1x1x96xf32>
    %20 = vector.shape_cast %19 : vector<1x1x96xf32> to vector<1x96xf32>
    %c0_20 = arith.constant 0 : index
    %c0_21 = arith.constant 0 : index
    %c0_22 = arith.constant 0 : index
    %21 = vector.load %arg6[%c0_20, %c0_21, %c0_22] : memref<2x1x32xf32, #tpu.memory_space<vmem>>, vector<1x1x32xf32>
    %22 = vector.shape_cast %21 : vector<1x1x32xf32> to vector<1x32xf32>
    %c1_23 = arith.constant 1 : index
    %c0_24 = arith.constant 0 : index
    %c0_25 = arith.constant 0 : index
    %23 = vector.load %arg6[%c1_23, %c0_24, %c0_25] : memref<2x1x32xf32, #tpu.memory_space<vmem>>, vector<1x1x32xf32>
    %24 = vector.shape_cast %23 : vector<1x1x32xf32> to vector<1x32xf32>
    %25 = arith.truncf %8 : vector<64x32xf32> to vector<64x32xbf16>
    %cst_26 = arith.constant dense<0.000000e+00> : vector<64x96xf32>
    %26 = tpu.matmul %25, %10, %cst_26 {dimension_numbers = #tpu.dot_dimension_numbers<[1], [0], [0], [1], [0, 0, 1, 1], [], []>} : vector<64x32xbf16>, vector<32x96xbf16>, vector<64x96xf32> -> vector<64x96xf32>
    %27 = vector.broadcast %18 : vector<1x96xf32> to vector<64x96xf32>
    %28 = arith.addf %26, %27 : vector<64x96xf32>
    %29 = vector.shape_cast %28 : vector<64x96xf32> to vector<8x8x96xf32>
    %c0_27 = arith.constant 0 : index
    %c0_28 = arith.constant 0 : index
    %30 = vector.load %arg1[%c0_27, %c0_28] : memref<8x1xi32, #tpu.memory_space<vmem>>, vector<8x1xi32>
    %c0_i32 = arith.constant 0 : i32
    %31 = vector.broadcast %c0_i32 : i32 to vector<8x1xi32>
    %32 = arith.cmpi sgt, %30, %31 : vector<8x1xi32>
    %c1_i32 = arith.constant 1 : i32
    %33 = vector.broadcast %c1_i32 : i32 to vector<8x1xi32>
    %34 = arith.cmpi sgt, %30, %33 : vector<8x1xi32>
    %c2_i32 = arith.constant 2 : i32
    %35 = vector.broadcast %c2_i32 : i32 to vector<8x1xi32>
    %36 = arith.cmpi sgt, %30, %35 : vector<8x1xi32>
    %c3_i32 = arith.constant 3 : i32
    %37 = vector.broadcast %c3_i32 : i32 to vector<8x1xi32>
    %38 = arith.cmpi sgt, %30, %37 : vector<8x1xi32>
    %c4_i32 = arith.constant 4 : i32
    %39 = vector.broadcast %c4_i32 : i32 to vector<8x1xi32>
    %40 = arith.cmpi sgt, %30, %39 : vector<8x1xi32>
    %c5_i32 = arith.constant 5 : i32
    %41 = vector.broadcast %c5_i32 : i32 to vector<8x1xi32>
    %42 = arith.cmpi sgt, %30, %41 : vector<8x1xi32>
    %c6_i32 = arith.constant 6 : i32
    %43 = vector.broadcast %c6_i32 : i32 to vector<8x1xi32>
    %44 = arith.cmpi sgt, %30, %43 : vector<8x1xi32>
    %c7_i32 = arith.constant 7 : i32
    %45 = vector.broadcast %c7_i32 : i32 to vector<8x1xi32>
    %46 = arith.cmpi sgt, %30, %45 : vector<8x1xi32>
    %cst_29 = arith.constant 0.000000e+00 : f32
    %47 = vector.broadcast %cst_29 : f32 to vector<8x32xf32>
    %cst_30 = arith.constant 0.000000e+00 : f32
    %48 = vector.broadcast %cst_30 : f32 to vector<8x32xf32>
    %49 = vector.extract_strided_slice %29 {offsets = [0, 0, 0], sizes = [1, 8, 96], strides = [1, 1, 1]} : vector<8x8x96xf32> to vector<1x8x96xf32>
    %50 = vector.shape_cast %49 : vector<1x8x96xf32> to vector<8x96xf32>
    %51 = arith.truncf %47 : vector<8x32xf32> to vector<8x32xbf16>
    %cst_31 = arith.constant dense<0.000000e+00> : vector<8x96xf32>
    %52 = tpu.matmul %51, %14, %cst_31 {dimension_numbers = #tpu.dot_dimension_numbers<[1], [0], [0], [1], [0, 0, 1, 1], [], []>} : vector<8x32xbf16>, vector<32x96xbf16>, vector<8x96xf32> -> vector<8x96xf32>
    %53 = vector.extract_strided_slice %50 {offsets = [0, 0], sizes = [8, 64], strides = [1, 1]} : vector<8x96xf32> to vector<8x64xf32>
    %54 = vector.extract_strided_slice %52 {offsets = [0, 0], sizes = [8, 64], strides = [1, 1]} : vector<8x96xf32> to vector<8x64xf32>
    %55 = arith.addf %53, %54 : vector<8x64xf32>
    %56 = arith.negf %55 : vector<8x64xf32>
    %57 = math.exp %56 : vector<8x64xf32>
    %cst_32 = arith.constant 1.000000e+00 : f32
    %58 = vector.broadcast %cst_32 : f32 to vector<8x64xf32>
    %59 = arith.addf %58, %57 : vector<8x64xf32>
    %60 = arith.divf %58, %59 : vector<8x64xf32>
    %61 = vector.extract_strided_slice %60 {offsets = [0, 0], sizes = [8, 32], strides = [1, 1]} : vector<8x64xf32> to vector<8x32xf32>
    %62 = vector.extract_strided_slice %60 {offsets = [0, 32], sizes = [8, 32], strides = [1, 1]} : vector<8x64xf32> to vector<8x32xf32>
    %63 = vector.extract_strided_slice %50 {offsets = [0, 64], sizes = [8, 32], strides = [1, 1]} : vector<8x96xf32> to vector<8x32xf32>
    %64 = vector.extract_strided_slice %52 {offsets = [0, 64], sizes = [8, 32], strides = [1, 1]} : vector<8x96xf32> to vector<8x32xf32>
    %65 = vector.broadcast %22 : vector<1x32xf32> to vector<8x32xf32>
    %66 = arith.addf %64, %65 : vector<8x32xf32>
    %67 = arith.mulf %61, %66 : vector<8x32xf32>
    %68 = arith.addf %63, %67 : vector<8x32xf32>
    %69 = math.tanh %68 : vector<8x32xf32>
    %cst_33 = arith.constant 1.000000e+00 : f32
    %70 = vector.broadcast %cst_33 : f32 to vector<8x32xf32>
    %71 = arith.subf %70, %62 : vector<8x32xf32>
    %72 = arith.mulf %71, %69 : vector<8x32xf32>
    %73 = arith.mulf %62, %47 : vector<8x32xf32>
    %74 = arith.addf %72, %73 : vector<8x32xf32>
    %75 = vector.shape_cast %32 : vector<8x1xi1> to vector<8x1xi1>
    %76 = vector.broadcast %75 : vector<8x1xi1> to vector<8x32xi1>
    %77 = arith.select %76, %74, %47 : vector<8x32xi1>, vector<8x32xf32>
    %78 = vector.extract_strided_slice %29 {offsets = [1, 0, 0], sizes = [1, 8, 96], strides = [1, 1, 1]} : vector<8x8x96xf32> to vector<1x8x96xf32>
    %79 = vector.shape_cast %78 : vector<1x8x96xf32> to vector<8x96xf32>
    %80 = arith.truncf %77 : vector<8x32xf32> to vector<8x32xbf16>
    %cst_34 = arith.constant dense<0.000000e+00> : vector<8x96xf32>
    %81 = tpu.matmul %80, %14, %cst_34 {dimension_numbers = #tpu.dot_dimension_numbers<[1], [0], [0], [1], [0, 0, 1, 1], [], []>} : vector<8x32xbf16>, vector<32x96xbf16>, vector<8x96xf32> -> vector<8x96xf32>
    %82 = vector.extract_strided_slice %79 {offsets = [0, 0], sizes = [8, 64], strides = [1, 1]} : vector<8x96xf32> to vector<8x64xf32>
    %83 = vector.extract_strided_slice %81 {offsets = [0, 0], sizes = [8, 64], strides = [1, 1]} : vector<8x96xf32> to vector<8x64xf32>
    %84 = arith.addf %82, %83 : vector<8x64xf32>
    %85 = arith.negf %84 : vector<8x64xf32>
    %86 = math.exp %85 : vector<8x64xf32>
    %cst_35 = arith.constant 1.000000e+00 : f32
    %87 = vector.broadcast %cst_35 : f32 to vector<8x64xf32>
    %88 = arith.addf %87, %86 : vector<8x64xf32>
    %89 = arith.divf %87, %88 : vector<8x64xf32>
    %90 = vector.extract_strided_slice %89 {offsets = [0, 0], sizes = [8, 32], strides = [1, 1]} : vector<8x64xf32> to vector<8x32xf32>
    %91 = vector.extract_strided_slice %89 {offsets = [0, 32], sizes = [8, 32], strides = [1, 1]} : vector<8x64xf32> to vector<8x32xf32>
    %92 = vector.extract_strided_slice %79 {offsets = [0, 64], sizes = [8, 32], strides = [1, 1]} : vector<8x96xf32> to vector<8x32xf32>
    %93 = vector.extract_strided_slice %81 {offsets = [0, 64], sizes = [8, 32], strides = [1, 1]} : vector<8x96xf32> to vector<8x32xf32>
    %94 = vector.broadcast %22 : vector<1x32xf32> to vector<8x32xf32>
    %95 = arith.addf %93, %94 : vector<8x32xf32>
    %96 = arith.mulf %90, %95 : vector<8x32xf32>
    %97 = arith.addf %92, %96 : vector<8x32xf32>
    %98 = math.tanh %97 : vector<8x32xf32>
    %cst_36 = arith.constant 1.000000e+00 : f32
    %99 = vector.broadcast %cst_36 : f32 to vector<8x32xf32>
    %100 = arith.subf %99, %91 : vector<8x32xf32>
    %101 = arith.mulf %100, %98 : vector<8x32xf32>
    %102 = arith.mulf %91, %77 : vector<8x32xf32>
    %103 = arith.addf %101, %102 : vector<8x32xf32>
    %104 = vector.shape_cast %34 : vector<8x1xi1> to vector<8x1xi1>
    %105 = vector.broadcast %104 : vector<8x1xi1> to vector<8x32xi1>
    %106 = arith.select %105, %103, %77 : vector<8x32xi1>, vector<8x32xf32>
    %107 = arith.truncf %77 : vector<8x32xf32> to vector<8x32xbf16>
    %cst_37 = arith.constant dense<0.000000e+00> : vector<8x96xf32>
    %108 = tpu.matmul %107, %12, %cst_37 {dimension_numbers = #tpu.dot_dimension_numbers<[1], [0], [0], [1], [0, 0, 1, 1], [], []>} : vector<8x32xbf16>, vector<32x96xbf16>, vector<8x96xf32> -> vector<8x96xf32>
    %109 = vector.broadcast %20 : vector<1x96xf32> to vector<8x96xf32>
    %110 = arith.addf %108, %109 : vector<8x96xf32>
    %111 = arith.truncf %48 : vector<8x32xf32> to vector<8x32xbf16>
    %cst_38 = arith.constant dense<0.000000e+00> : vector<8x96xf32>
    %112 = tpu.matmul %111, %16, %cst_38 {dimension_numbers = #tpu.dot_dimension_numbers<[1], [0], [0], [1], [0, 0, 1, 1], [], []>} : vector<8x32xbf16>, vector<32x96xbf16>, vector<8x96xf32> -> vector<8x96xf32>
    %113 = vector.extract_strided_slice %110 {offsets = [0, 0], sizes = [8, 64], strides = [1, 1]} : vector<8x96xf32> to vector<8x64xf32>
    %114 = vector.extract_strided_slice %112 {offsets = [0, 0], sizes = [8, 64], strides = [1, 1]} : vector<8x96xf32> to vector<8x64xf32>
    %115 = arith.addf %113, %114 : vector<8x64xf32>
    %116 = arith.negf %115 : vector<8x64xf32>
    %117 = math.exp %116 : vector<8x64xf32>
    %cst_39 = arith.constant 1.000000e+00 : f32
    %118 = vector.broadcast %cst_39 : f32 to vector<8x64xf32>
    %119 = arith.addf %118, %117 : vector<8x64xf32>
    %120 = arith.divf %118, %119 : vector<8x64xf32>
    %121 = vector.extract_strided_slice %120 {offsets = [0, 0], sizes = [8, 32], strides = [1, 1]} : vector<8x64xf32> to vector<8x32xf32>
    %122 = vector.extract_strided_slice %120 {offsets = [0, 32], sizes = [8, 32], strides = [1, 1]} : vector<8x64xf32> to vector<8x32xf32>
    %123 = vector.extract_strided_slice %110 {offsets = [0, 64], sizes = [8, 32], strides = [1, 1]} : vector<8x96xf32> to vector<8x32xf32>
    %124 = vector.extract_strided_slice %112 {offsets = [0, 64], sizes = [8, 32], strides = [1, 1]} : vector<8x96xf32> to vector<8x32xf32>
    %125 = vector.broadcast %24 : vector<1x32xf32> to vector<8x32xf32>
    %126 = arith.addf %124, %125 : vector<8x32xf32>
    %127 = arith.mulf %121, %126 : vector<8x32xf32>
    %128 = arith.addf %123, %127 : vector<8x32xf32>
    %129 = math.tanh %128 : vector<8x32xf32>
    %cst_40 = arith.constant 1.000000e+00 : f32
    %130 = vector.broadcast %cst_40 : f32 to vector<8x32xf32>
    %131 = arith.subf %130, %122 : vector<8x32xf32>
    %132 = arith.mulf %131, %129 : vector<8x32xf32>
    %133 = arith.mulf %122, %48 : vector<8x32xf32>
    %134 = arith.addf %132, %133 : vector<8x32xf32>
    %135 = vector.shape_cast %32 : vector<8x1xi1> to vector<8x1xi1>
    %136 = vector.broadcast %135 : vector<8x1xi1> to vector<8x32xi1>
    %137 = arith.select %136, %134, %48 : vector<8x32xi1>, vector<8x32xf32>
    %138 = vector.extract_strided_slice %29 {offsets = [2, 0, 0], sizes = [1, 8, 96], strides = [1, 1, 1]} : vector<8x8x96xf32> to vector<1x8x96xf32>
    %139 = vector.shape_cast %138 : vector<1x8x96xf32> to vector<8x96xf32>
    %140 = arith.truncf %106 : vector<8x32xf32> to vector<8x32xbf16>
    %cst_41 = arith.constant dense<0.000000e+00> : vector<8x96xf32>
    %141 = tpu.matmul %140, %14, %cst_41 {dimension_numbers = #tpu.dot_dimension_numbers<[1], [0], [0], [1], [0, 0, 1, 1], [], []>} : vector<8x32xbf16>, vector<32x96xbf16>, vector<8x96xf32> -> vector<8x96xf32>
    %142 = vector.extract_strided_slice %139 {offsets = [0, 0], sizes = [8, 64], strides = [1, 1]} : vector<8x96xf32> to vector<8x64xf32>
    %143 = vector.extract_strided_slice %141 {offsets = [0, 0], sizes = [8, 64], strides = [1, 1]} : vector<8x96xf32> to vector<8x64xf32>
    %144 = arith.addf %142, %143 : vector<8x64xf32>
    %145 = arith.negf %144 : vector<8x64xf32>
    %146 = math.exp %145 : vector<8x64xf32>
    %cst_42 = arith.constant 1.000000e+00 : f32
    %147 = vector.broadcast %cst_42 : f32 to vector<8x64xf32>
    %148 = arith.addf %147, %146 : vector<8x64xf32>
    %149 = arith.divf %147, %148 : vector<8x64xf32>
    %150 = vector.extract_strided_slice %149 {offsets = [0, 0], sizes = [8, 32], strides = [1, 1]} : vector<8x64xf32> to vector<8x32xf32>
    %151 = vector.extract_strided_slice %149 {offsets = [0, 32], sizes = [8, 32], strides = [1, 1]} : vector<8x64xf32> to vector<8x32xf32>
    %152 = vector.extract_strided_slice %139 {offsets = [0, 64], sizes = [8, 32], strides = [1, 1]} : vector<8x96xf32> to vector<8x32xf32>
    %153 = vector.extract_strided_slice %141 {offsets = [0, 64], sizes = [8, 32], strides = [1, 1]} : vector<8x96xf32> to vector<8x32xf32>
    %154 = vector.broadcast %22 : vector<1x32xf32> to vector<8x32xf32>
    %155 = arith.addf %153, %154 : vector<8x32xf32>
    %156 = arith.mulf %150, %155 : vector<8x32xf32>
    %157 = arith.addf %152, %156 : vector<8x32xf32>
    %158 = math.tanh %157 : vector<8x32xf32>
    %cst_43 = arith.constant 1.000000e+00 : f32
    %159 = vector.broadcast %cst_43 : f32 to vector<8x32xf32>
    %160 = arith.subf %159, %151 : vector<8x32xf32>
    %161 = arith.mulf %160, %158 : vector<8x32xf32>
    %162 = arith.mulf %151, %106 : vector<8x32xf32>
    %163 = arith.addf %161, %162 : vector<8x32xf32>
    %164 = vector.shape_cast %36 : vector<8x1xi1> to vector<8x1xi1>
    %165 = vector.broadcast %164 : vector<8x1xi1> to vector<8x32xi1>
    %166 = arith.select %165, %163, %106 : vector<8x32xi1>, vector<8x32xf32>
    %167 = arith.truncf %106 : vector<8x32xf32> to vector<8x32xbf16>
    %cst_44 = arith.constant dense<0.000000e+00> : vector<8x96xf32>
    %168 = tpu.matmul %167, %12, %cst_44 {dimension_numbers = #tpu.dot_dimension_numbers<[1], [0], [0], [1], [0, 0, 1, 1], [], []>} : vector<8x32xbf16>, vector<32x96xbf16>, vector<8x96xf32> -> vector<8x96xf32>
    %169 = vector.broadcast %20 : vector<1x96xf32> to vector<8x96xf32>
    %170 = arith.addf %168, %169 : vector<8x96xf32>
    %171 = arith.truncf %137 : vector<8x32xf32> to vector<8x32xbf16>
    %cst_45 = arith.constant dense<0.000000e+00> : vector<8x96xf32>
    %172 = tpu.matmul %171, %16, %cst_45 {dimension_numbers = #tpu.dot_dimension_numbers<[1], [0], [0], [1], [0, 0, 1, 1], [], []>} : vector<8x32xbf16>, vector<32x96xbf16>, vector<8x96xf32> -> vector<8x96xf32>
    %173 = vector.extract_strided_slice %170 {offsets = [0, 0], sizes = [8, 64], strides = [1, 1]} : vector<8x96xf32> to vector<8x64xf32>
    %174 = vector.extract_strided_slice %172 {offsets = [0, 0], sizes = [8, 64], strides = [1, 1]} : vector<8x96xf32> to vector<8x64xf32>
    %175 = arith.addf %173, %174 : vector<8x64xf32>
    %176 = arith.negf %175 : vector<8x64xf32>
    %177 = math.exp %176 : vector<8x64xf32>
    %cst_46 = arith.constant 1.000000e+00 : f32
    %178 = vector.broadcast %cst_46 : f32 to vector<8x64xf32>
    %179 = arith.addf %178, %177 : vector<8x64xf32>
    %180 = arith.divf %178, %179 : vector<8x64xf32>
    %181 = vector.extract_strided_slice %180 {offsets = [0, 0], sizes = [8, 32], strides = [1, 1]} : vector<8x64xf32> to vector<8x32xf32>
    %182 = vector.extract_strided_slice %180 {offsets = [0, 32], sizes = [8, 32], strides = [1, 1]} : vector<8x64xf32> to vector<8x32xf32>
    %183 = vector.extract_strided_slice %170 {offsets = [0, 64], sizes = [8, 32], strides = [1, 1]} : vector<8x96xf32> to vector<8x32xf32>
    %184 = vector.extract_strided_slice %172 {offsets = [0, 64], sizes = [8, 32], strides = [1, 1]} : vector<8x96xf32> to vector<8x32xf32>
    %185 = vector.broadcast %24 : vector<1x32xf32> to vector<8x32xf32>
    %186 = arith.addf %184, %185 : vector<8x32xf32>
    %187 = arith.mulf %181, %186 : vector<8x32xf32>
    %188 = arith.addf %183, %187 : vector<8x32xf32>
    %189 = math.tanh %188 : vector<8x32xf32>
    %cst_47 = arith.constant 1.000000e+00 : f32
    %190 = vector.broadcast %cst_47 : f32 to vector<8x32xf32>
    %191 = arith.subf %190, %182 : vector<8x32xf32>
    %192 = arith.mulf %191, %189 : vector<8x32xf32>
    %193 = arith.mulf %182, %137 : vector<8x32xf32>
    %194 = arith.addf %192, %193 : vector<8x32xf32>
    %195 = vector.shape_cast %34 : vector<8x1xi1> to vector<8x1xi1>
    %196 = vector.broadcast %195 : vector<8x1xi1> to vector<8x32xi1>
    %197 = arith.select %196, %194, %137 : vector<8x32xi1>, vector<8x32xf32>
    %198 = vector.extract_strided_slice %29 {offsets = [3, 0, 0], sizes = [1, 8, 96], strides = [1, 1, 1]} : vector<8x8x96xf32> to vector<1x8x96xf32>
    %199 = vector.shape_cast %198 : vector<1x8x96xf32> to vector<8x96xf32>
    %200 = arith.truncf %166 : vector<8x32xf32> to vector<8x32xbf16>
    %cst_48 = arith.constant dense<0.000000e+00> : vector<8x96xf32>
    %201 = tpu.matmul %200, %14, %cst_48 {dimension_numbers = #tpu.dot_dimension_numbers<[1], [0], [0], [1], [0, 0, 1, 1], [], []>} : vector<8x32xbf16>, vector<32x96xbf16>, vector<8x96xf32> -> vector<8x96xf32>
    %202 = vector.extract_strided_slice %199 {offsets = [0, 0], sizes = [8, 64], strides = [1, 1]} : vector<8x96xf32> to vector<8x64xf32>
    %203 = vector.extract_strided_slice %201 {offsets = [0, 0], sizes = [8, 64], strides = [1, 1]} : vector<8x96xf32> to vector<8x64xf32>
    %204 = arith.addf %202, %203 : vector<8x64xf32>
    %205 = arith.negf %204 : vector<8x64xf32>
    %206 = math.exp %205 : vector<8x64xf32>
    %cst_49 = arith.constant 1.000000e+00 : f32
    %207 = vector.broadcast %cst_49 : f32 to vector<8x64xf32>
    %208 = arith.addf %207, %206 : vector<8x64xf32>
    %209 = arith.divf %207, %208 : vector<8x64xf32>
    %210 = vector.extract_strided_slice %209 {offsets = [0, 0], sizes = [8, 32], strides = [1, 1]} : vector<8x64xf32> to vector<8x32xf32>
    %211 = vector.extract_strided_slice %209 {offsets = [0, 32], sizes = [8, 32], strides = [1, 1]} : vector<8x64xf32> to vector<8x32xf32>
    %212 = vector.extract_strided_slice %199 {offsets = [0, 64], sizes = [8, 32], strides = [1, 1]} : vector<8x96xf32> to vector<8x32xf32>
    %213 = vector.extract_strided_slice %201 {offsets = [0, 64], sizes = [8, 32], strides = [1, 1]} : vector<8x96xf32> to vector<8x32xf32>
    %214 = vector.broadcast %22 : vector<1x32xf32> to vector<8x32xf32>
    %215 = arith.addf %213, %214 : vector<8x32xf32>
    %216 = arith.mulf %210, %215 : vector<8x32xf32>
    %217 = arith.addf %212, %216 : vector<8x32xf32>
    %218 = math.tanh %217 : vector<8x32xf32>
    %cst_50 = arith.constant 1.000000e+00 : f32
    %219 = vector.broadcast %cst_50 : f32 to vector<8x32xf32>
    %220 = arith.subf %219, %211 : vector<8x32xf32>
    %221 = arith.mulf %220, %218 : vector<8x32xf32>
    %222 = arith.mulf %211, %166 : vector<8x32xf32>
    %223 = arith.addf %221, %222 : vector<8x32xf32>
    %224 = vector.shape_cast %38 : vector<8x1xi1> to vector<8x1xi1>
    %225 = vector.broadcast %224 : vector<8x1xi1> to vector<8x32xi1>
    %226 = arith.select %225, %223, %166 : vector<8x32xi1>, vector<8x32xf32>
    %227 = arith.truncf %166 : vector<8x32xf32> to vector<8x32xbf16>
    %cst_51 = arith.constant dense<0.000000e+00> : vector<8x96xf32>
    %228 = tpu.matmul %227, %12, %cst_51 {dimension_numbers = #tpu.dot_dimension_numbers<[1], [0], [0], [1], [0, 0, 1, 1], [], []>} : vector<8x32xbf16>, vector<32x96xbf16>, vector<8x96xf32> -> vector<8x96xf32>
    %229 = vector.broadcast %20 : vector<1x96xf32> to vector<8x96xf32>
    %230 = arith.addf %228, %229 : vector<8x96xf32>
    %231 = arith.truncf %197 : vector<8x32xf32> to vector<8x32xbf16>
    %cst_52 = arith.constant dense<0.000000e+00> : vector<8x96xf32>
    %232 = tpu.matmul %231, %16, %cst_52 {dimension_numbers = #tpu.dot_dimension_numbers<[1], [0], [0], [1], [0, 0, 1, 1], [], []>} : vector<8x32xbf16>, vector<32x96xbf16>, vector<8x96xf32> -> vector<8x96xf32>
    %233 = vector.extract_strided_slice %230 {offsets = [0, 0], sizes = [8, 64], strides = [1, 1]} : vector<8x96xf32> to vector<8x64xf32>
    %234 = vector.extract_strided_slice %232 {offsets = [0, 0], sizes = [8, 64], strides = [1, 1]} : vector<8x96xf32> to vector<8x64xf32>
    %235 = arith.addf %233, %234 : vector<8x64xf32>
    %236 = arith.negf %235 : vector<8x64xf32>
    %237 = math.exp %236 : vector<8x64xf32>
    %cst_53 = arith.constant 1.000000e+00 : f32
    %238 = vector.broadcast %cst_53 : f32 to vector<8x64xf32>
    %239 = arith.addf %238, %237 : vector<8x64xf32>
    %240 = arith.divf %238, %239 : vector<8x64xf32>
    %241 = vector.extract_strided_slice %240 {offsets = [0, 0], sizes = [8, 32], strides = [1, 1]} : vector<8x64xf32> to vector<8x32xf32>
    %242 = vector.extract_strided_slice %240 {offsets = [0, 32], sizes = [8, 32], strides = [1, 1]} : vector<8x64xf32> to vector<8x32xf32>
    %243 = vector.extract_strided_slice %230 {offsets = [0, 64], sizes = [8, 32], strides = [1, 1]} : vector<8x96xf32> to vector<8x32xf32>
    %244 = vector.extract_strided_slice %232 {offsets = [0, 64], sizes = [8, 32], strides = [1, 1]} : vector<8x96xf32> to vector<8x32xf32>
    %245 = vector.broadcast %24 : vector<1x32xf32> to vector<8x32xf32>
    %246 = arith.addf %244, %245 : vector<8x32xf32>
    %247 = arith.mulf %241, %246 : vector<8x32xf32>
    %248 = arith.addf %243, %247 : vector<8x32xf32>
    %249 = math.tanh %248 : vector<8x32xf32>
    %cst_54 = arith.constant 1.000000e+00 : f32
    %250 = vector.broadcast %cst_54 : f32 to vector<8x32xf32>
    %251 = arith.subf %250, %242 : vector<8x32xf32>
    %252 = arith.mulf %251, %249 : vector<8x32xf32>
    %253 = arith.mulf %242, %197 : vector<8x32xf32>
    %254 = arith.addf %252, %253 : vector<8x32xf32>
    %255 = vector.shape_cast %36 : vector<8x1xi1> to vector<8x1xi1>
    %256 = vector.broadcast %255 : vector<8x1xi1> to vector<8x32xi1>
    %257 = arith.select %256, %254, %197 : vector<8x32xi1>, vector<8x32xf32>
    %258 = vector.extract_strided_slice %29 {offsets = [4, 0, 0], sizes = [1, 8, 96], strides = [1, 1, 1]} : vector<8x8x96xf32> to vector<1x8x96xf32>
    %259 = vector.shape_cast %258 : vector<1x8x96xf32> to vector<8x96xf32>
    %260 = arith.truncf %226 : vector<8x32xf32> to vector<8x32xbf16>
    %cst_55 = arith.constant dense<0.000000e+00> : vector<8x96xf32>
    %261 = tpu.matmul %260, %14, %cst_55 {dimension_numbers = #tpu.dot_dimension_numbers<[1], [0], [0], [1], [0, 0, 1, 1], [], []>} : vector<8x32xbf16>, vector<32x96xbf16>, vector<8x96xf32> -> vector<8x96xf32>
    %262 = vector.extract_strided_slice %259 {offsets = [0, 0], sizes = [8, 64], strides = [1, 1]} : vector<8x96xf32> to vector<8x64xf32>
    %263 = vector.extract_strided_slice %261 {offsets = [0, 0], sizes = [8, 64], strides = [1, 1]} : vector<8x96xf32> to vector<8x64xf32>
    %264 = arith.addf %262, %263 : vector<8x64xf32>
    %265 = arith.negf %264 : vector<8x64xf32>
    %266 = math.exp %265 : vector<8x64xf32>
    %cst_56 = arith.constant 1.000000e+00 : f32
    %267 = vector.broadcast %cst_56 : f32 to vector<8x64xf32>
    %268 = arith.addf %267, %266 : vector<8x64xf32>
    %269 = arith.divf %267, %268 : vector<8x64xf32>
    %270 = vector.extract_strided_slice %269 {offsets = [0, 0], sizes = [8, 32], strides = [1, 1]} : vector<8x64xf32> to vector<8x32xf32>
    %271 = vector.extract_strided_slice %269 {offsets = [0, 32], sizes = [8, 32], strides = [1, 1]} : vector<8x64xf32> to vector<8x32xf32>
    %272 = vector.extract_strided_slice %259 {offsets = [0, 64], sizes = [8, 32], strides = [1, 1]} : vector<8x96xf32> to vector<8x32xf32>
    %273 = vector.extract_strided_slice %261 {offsets = [0, 64], sizes = [8, 32], strides = [1, 1]} : vector<8x96xf32> to vector<8x32xf32>
    %274 = vector.broadcast %22 : vector<1x32xf32> to vector<8x32xf32>
    %275 = arith.addf %273, %274 : vector<8x32xf32>
    %276 = arith.mulf %270, %275 : vector<8x32xf32>
    %277 = arith.addf %272, %276 : vector<8x32xf32>
    %278 = math.tanh %277 : vector<8x32xf32>
    %cst_57 = arith.constant 1.000000e+00 : f32
    %279 = vector.broadcast %cst_57 : f32 to vector<8x32xf32>
    %280 = arith.subf %279, %271 : vector<8x32xf32>
    %281 = arith.mulf %280, %278 : vector<8x32xf32>
    %282 = arith.mulf %271, %226 : vector<8x32xf32>
    %283 = arith.addf %281, %282 : vector<8x32xf32>
    %284 = vector.shape_cast %40 : vector<8x1xi1> to vector<8x1xi1>
    %285 = vector.broadcast %284 : vector<8x1xi1> to vector<8x32xi1>
    %286 = arith.select %285, %283, %226 : vector<8x32xi1>, vector<8x32xf32>
    %287 = arith.truncf %226 : vector<8x32xf32> to vector<8x32xbf16>
    %cst_58 = arith.constant dense<0.000000e+00> : vector<8x96xf32>
    %288 = tpu.matmul %287, %12, %cst_58 {dimension_numbers = #tpu.dot_dimension_numbers<[1], [0], [0], [1], [0, 0, 1, 1], [], []>} : vector<8x32xbf16>, vector<32x96xbf16>, vector<8x96xf32> -> vector<8x96xf32>
    %289 = vector.broadcast %20 : vector<1x96xf32> to vector<8x96xf32>
    %290 = arith.addf %288, %289 : vector<8x96xf32>
    %291 = arith.truncf %257 : vector<8x32xf32> to vector<8x32xbf16>
    %cst_59 = arith.constant dense<0.000000e+00> : vector<8x96xf32>
    %292 = tpu.matmul %291, %16, %cst_59 {dimension_numbers = #tpu.dot_dimension_numbers<[1], [0], [0], [1], [0, 0, 1, 1], [], []>} : vector<8x32xbf16>, vector<32x96xbf16>, vector<8x96xf32> -> vector<8x96xf32>
    %293 = vector.extract_strided_slice %290 {offsets = [0, 0], sizes = [8, 64], strides = [1, 1]} : vector<8x96xf32> to vector<8x64xf32>
    %294 = vector.extract_strided_slice %292 {offsets = [0, 0], sizes = [8, 64], strides = [1, 1]} : vector<8x96xf32> to vector<8x64xf32>
    %295 = arith.addf %293, %294 : vector<8x64xf32>
    %296 = arith.negf %295 : vector<8x64xf32>
    %297 = math.exp %296 : vector<8x64xf32>
    %cst_60 = arith.constant 1.000000e+00 : f32
    %298 = vector.broadcast %cst_60 : f32 to vector<8x64xf32>
    %299 = arith.addf %298, %297 : vector<8x64xf32>
    %300 = arith.divf %298, %299 : vector<8x64xf32>
    %301 = vector.extract_strided_slice %300 {offsets = [0, 0], sizes = [8, 32], strides = [1, 1]} : vector<8x64xf32> to vector<8x32xf32>
    %302 = vector.extract_strided_slice %300 {offsets = [0, 32], sizes = [8, 32], strides = [1, 1]} : vector<8x64xf32> to vector<8x32xf32>
    %303 = vector.extract_strided_slice %290 {offsets = [0, 64], sizes = [8, 32], strides = [1, 1]} : vector<8x96xf32> to vector<8x32xf32>
    %304 = vector.extract_strided_slice %292 {offsets = [0, 64], sizes = [8, 32], strides = [1, 1]} : vector<8x96xf32> to vector<8x32xf32>
    %305 = vector.broadcast %24 : vector<1x32xf32> to vector<8x32xf32>
    %306 = arith.addf %304, %305 : vector<8x32xf32>
    %307 = arith.mulf %301, %306 : vector<8x32xf32>
    %308 = arith.addf %303, %307 : vector<8x32xf32>
    %309 = math.tanh %308 : vector<8x32xf32>
    %cst_61 = arith.constant 1.000000e+00 : f32
    %310 = vector.broadcast %cst_61 : f32 to vector<8x32xf32>
    %311 = arith.subf %310, %302 : vector<8x32xf32>
    %312 = arith.mulf %311, %309 : vector<8x32xf32>
    %313 = arith.mulf %302, %257 : vector<8x32xf32>
    %314 = arith.addf %312, %313 : vector<8x32xf32>
    %315 = vector.shape_cast %38 : vector<8x1xi1> to vector<8x1xi1>
    %316 = vector.broadcast %315 : vector<8x1xi1> to vector<8x32xi1>
    %317 = arith.select %316, %314, %257 : vector<8x32xi1>, vector<8x32xf32>
    %318 = vector.extract_strided_slice %29 {offsets = [5, 0, 0], sizes = [1, 8, 96], strides = [1, 1, 1]} : vector<8x8x96xf32> to vector<1x8x96xf32>
    %319 = vector.shape_cast %318 : vector<1x8x96xf32> to vector<8x96xf32>
    %320 = arith.truncf %286 : vector<8x32xf32> to vector<8x32xbf16>
    %cst_62 = arith.constant dense<0.000000e+00> : vector<8x96xf32>
    %321 = tpu.matmul %320, %14, %cst_62 {dimension_numbers = #tpu.dot_dimension_numbers<[1], [0], [0], [1], [0, 0, 1, 1], [], []>} : vector<8x32xbf16>, vector<32x96xbf16>, vector<8x96xf32> -> vector<8x96xf32>
    %322 = vector.extract_strided_slice %319 {offsets = [0, 0], sizes = [8, 64], strides = [1, 1]} : vector<8x96xf32> to vector<8x64xf32>
    %323 = vector.extract_strided_slice %321 {offsets = [0, 0], sizes = [8, 64], strides = [1, 1]} : vector<8x96xf32> to vector<8x64xf32>
    %324 = arith.addf %322, %323 : vector<8x64xf32>
    %325 = arith.negf %324 : vector<8x64xf32>
    %326 = math.exp %325 : vector<8x64xf32>
    %cst_63 = arith.constant 1.000000e+00 : f32
    %327 = vector.broadcast %cst_63 : f32 to vector<8x64xf32>
    %328 = arith.addf %327, %326 : vector<8x64xf32>
    %329 = arith.divf %327, %328 : vector<8x64xf32>
    %330 = vector.extract_strided_slice %329 {offsets = [0, 0], sizes = [8, 32], strides = [1, 1]} : vector<8x64xf32> to vector<8x32xf32>
    %331 = vector.extract_strided_slice %329 {offsets = [0, 32], sizes = [8, 32], strides = [1, 1]} : vector<8x64xf32> to vector<8x32xf32>
    %332 = vector.extract_strided_slice %319 {offsets = [0, 64], sizes = [8, 32], strides = [1, 1]} : vector<8x96xf32> to vector<8x32xf32>
    %333 = vector.extract_strided_slice %321 {offsets = [0, 64], sizes = [8, 32], strides = [1, 1]} : vector<8x96xf32> to vector<8x32xf32>
    %334 = vector.broadcast %22 : vector<1x32xf32> to vector<8x32xf32>
    %335 = arith.addf %333, %334 : vector<8x32xf32>
    %336 = arith.mulf %330, %335 : vector<8x32xf32>
    %337 = arith.addf %332, %336 : vector<8x32xf32>
    %338 = math.tanh %337 : vector<8x32xf32>
    %cst_64 = arith.constant 1.000000e+00 : f32
    %339 = vector.broadcast %cst_64 : f32 to vector<8x32xf32>
    %340 = arith.subf %339, %331 : vector<8x32xf32>
    %341 = arith.mulf %340, %338 : vector<8x32xf32>
    %342 = arith.mulf %331, %286 : vector<8x32xf32>
    %343 = arith.addf %341, %342 : vector<8x32xf32>
    %344 = vector.shape_cast %42 : vector<8x1xi1> to vector<8x1xi1>
    %345 = vector.broadcast %344 : vector<8x1xi1> to vector<8x32xi1>
    %346 = arith.select %345, %343, %286 : vector<8x32xi1>, vector<8x32xf32>
    %347 = arith.truncf %286 : vector<8x32xf32> to vector<8x32xbf16>
    %cst_65 = arith.constant dense<0.000000e+00> : vector<8x96xf32>
    %348 = tpu.matmul %347, %12, %cst_65 {dimension_numbers = #tpu.dot_dimension_numbers<[1], [0], [0], [1], [0, 0, 1, 1], [], []>} : vector<8x32xbf16>, vector<32x96xbf16>, vector<8x96xf32> -> vector<8x96xf32>
    %349 = vector.broadcast %20 : vector<1x96xf32> to vector<8x96xf32>
    %350 = arith.addf %348, %349 : vector<8x96xf32>
    %351 = arith.truncf %317 : vector<8x32xf32> to vector<8x32xbf16>
    %cst_66 = arith.constant dense<0.000000e+00> : vector<8x96xf32>
    %352 = tpu.matmul %351, %16, %cst_66 {dimension_numbers = #tpu.dot_dimension_numbers<[1], [0], [0], [1], [0, 0, 1, 1], [], []>} : vector<8x32xbf16>, vector<32x96xbf16>, vector<8x96xf32> -> vector<8x96xf32>
    %353 = vector.extract_strided_slice %350 {offsets = [0, 0], sizes = [8, 64], strides = [1, 1]} : vector<8x96xf32> to vector<8x64xf32>
    %354 = vector.extract_strided_slice %352 {offsets = [0, 0], sizes = [8, 64], strides = [1, 1]} : vector<8x96xf32> to vector<8x64xf32>
    %355 = arith.addf %353, %354 : vector<8x64xf32>
    %356 = arith.negf %355 : vector<8x64xf32>
    %357 = math.exp %356 : vector<8x64xf32>
    %cst_67 = arith.constant 1.000000e+00 : f32
    %358 = vector.broadcast %cst_67 : f32 to vector<8x64xf32>
    %359 = arith.addf %358, %357 : vector<8x64xf32>
    %360 = arith.divf %358, %359 : vector<8x64xf32>
    %361 = vector.extract_strided_slice %360 {offsets = [0, 0], sizes = [8, 32], strides = [1, 1]} : vector<8x64xf32> to vector<8x32xf32>
    %362 = vector.extract_strided_slice %360 {offsets = [0, 32], sizes = [8, 32], strides = [1, 1]} : vector<8x64xf32> to vector<8x32xf32>
    %363 = vector.extract_strided_slice %350 {offsets = [0, 64], sizes = [8, 32], strides = [1, 1]} : vector<8x96xf32> to vector<8x32xf32>
    %364 = vector.extract_strided_slice %352 {offsets = [0, 64], sizes = [8, 32], strides = [1, 1]} : vector<8x96xf32> to vector<8x32xf32>
    %365 = vector.broadcast %24 : vector<1x32xf32> to vector<8x32xf32>
    %366 = arith.addf %364, %365 : vector<8x32xf32>
    %367 = arith.mulf %361, %366 : vector<8x32xf32>
    %368 = arith.addf %363, %367 : vector<8x32xf32>
    %369 = math.tanh %368 : vector<8x32xf32>
    %cst_68 = arith.constant 1.000000e+00 : f32
    %370 = vector.broadcast %cst_68 : f32 to vector<8x32xf32>
    %371 = arith.subf %370, %362 : vector<8x32xf32>
    %372 = arith.mulf %371, %369 : vector<8x32xf32>
    %373 = arith.mulf %362, %317 : vector<8x32xf32>
    %374 = arith.addf %372, %373 : vector<8x32xf32>
    %375 = vector.shape_cast %40 : vector<8x1xi1> to vector<8x1xi1>
    %376 = vector.broadcast %375 : vector<8x1xi1> to vector<8x32xi1>
    %377 = arith.select %376, %374, %317 : vector<8x32xi1>, vector<8x32xf32>
    %378 = vector.extract_strided_slice %29 {offsets = [6, 0, 0], sizes = [1, 8, 96], strides = [1, 1, 1]} : vector<8x8x96xf32> to vector<1x8x96xf32>
    %379 = vector.shape_cast %378 : vector<1x8x96xf32> to vector<8x96xf32>
    %380 = arith.truncf %346 : vector<8x32xf32> to vector<8x32xbf16>
    %cst_69 = arith.constant dense<0.000000e+00> : vector<8x96xf32>
    %381 = tpu.matmul %380, %14, %cst_69 {dimension_numbers = #tpu.dot_dimension_numbers<[1], [0], [0], [1], [0, 0, 1, 1], [], []>} : vector<8x32xbf16>, vector<32x96xbf16>, vector<8x96xf32> -> vector<8x96xf32>
    %382 = vector.extract_strided_slice %379 {offsets = [0, 0], sizes = [8, 64], strides = [1, 1]} : vector<8x96xf32> to vector<8x64xf32>
    %383 = vector.extract_strided_slice %381 {offsets = [0, 0], sizes = [8, 64], strides = [1, 1]} : vector<8x96xf32> to vector<8x64xf32>
    %384 = arith.addf %382, %383 : vector<8x64xf32>
    %385 = arith.negf %384 : vector<8x64xf32>
    %386 = math.exp %385 : vector<8x64xf32>
    %cst_70 = arith.constant 1.000000e+00 : f32
    %387 = vector.broadcast %cst_70 : f32 to vector<8x64xf32>
    %388 = arith.addf %387, %386 : vector<8x64xf32>
    %389 = arith.divf %387, %388 : vector<8x64xf32>
    %390 = vector.extract_strided_slice %389 {offsets = [0, 0], sizes = [8, 32], strides = [1, 1]} : vector<8x64xf32> to vector<8x32xf32>
    %391 = vector.extract_strided_slice %389 {offsets = [0, 32], sizes = [8, 32], strides = [1, 1]} : vector<8x64xf32> to vector<8x32xf32>
    %392 = vector.extract_strided_slice %379 {offsets = [0, 64], sizes = [8, 32], strides = [1, 1]} : vector<8x96xf32> to vector<8x32xf32>
    %393 = vector.extract_strided_slice %381 {offsets = [0, 64], sizes = [8, 32], strides = [1, 1]} : vector<8x96xf32> to vector<8x32xf32>
    %394 = vector.broadcast %22 : vector<1x32xf32> to vector<8x32xf32>
    %395 = arith.addf %393, %394 : vector<8x32xf32>
    %396 = arith.mulf %390, %395 : vector<8x32xf32>
    %397 = arith.addf %392, %396 : vector<8x32xf32>
    %398 = math.tanh %397 : vector<8x32xf32>
    %cst_71 = arith.constant 1.000000e+00 : f32
    %399 = vector.broadcast %cst_71 : f32 to vector<8x32xf32>
    %400 = arith.subf %399, %391 : vector<8x32xf32>
    %401 = arith.mulf %400, %398 : vector<8x32xf32>
    %402 = arith.mulf %391, %346 : vector<8x32xf32>
    %403 = arith.addf %401, %402 : vector<8x32xf32>
    %404 = vector.shape_cast %44 : vector<8x1xi1> to vector<8x1xi1>
    %405 = vector.broadcast %404 : vector<8x1xi1> to vector<8x32xi1>
    %406 = arith.select %405, %403, %346 : vector<8x32xi1>, vector<8x32xf32>
    %407 = arith.truncf %346 : vector<8x32xf32> to vector<8x32xbf16>
    %cst_72 = arith.constant dense<0.000000e+00> : vector<8x96xf32>
    %408 = tpu.matmul %407, %12, %cst_72 {dimension_numbers = #tpu.dot_dimension_numbers<[1], [0], [0], [1], [0, 0, 1, 1], [], []>} : vector<8x32xbf16>, vector<32x96xbf16>, vector<8x96xf32> -> vector<8x96xf32>
    %409 = vector.broadcast %20 : vector<1x96xf32> to vector<8x96xf32>
    %410 = arith.addf %408, %409 : vector<8x96xf32>
    %411 = arith.truncf %377 : vector<8x32xf32> to vector<8x32xbf16>
    %cst_73 = arith.constant dense<0.000000e+00> : vector<8x96xf32>
    %412 = tpu.matmul %411, %16, %cst_73 {dimension_numbers = #tpu.dot_dimension_numbers<[1], [0], [0], [1], [0, 0, 1, 1], [], []>} : vector<8x32xbf16>, vector<32x96xbf16>, vector<8x96xf32> -> vector<8x96xf32>
    %413 = vector.extract_strided_slice %410 {offsets = [0, 0], sizes = [8, 64], strides = [1, 1]} : vector<8x96xf32> to vector<8x64xf32>
    %414 = vector.extract_strided_slice %412 {offsets = [0, 0], sizes = [8, 64], strides = [1, 1]} : vector<8x96xf32> to vector<8x64xf32>
    %415 = arith.addf %413, %414 : vector<8x64xf32>
    %416 = arith.negf %415 : vector<8x64xf32>
    %417 = math.exp %416 : vector<8x64xf32>
    %cst_74 = arith.constant 1.000000e+00 : f32
    %418 = vector.broadcast %cst_74 : f32 to vector<8x64xf32>
    %419 = arith.addf %418, %417 : vector<8x64xf32>
    %420 = arith.divf %418, %419 : vector<8x64xf32>
    %421 = vector.extract_strided_slice %420 {offsets = [0, 0], sizes = [8, 32], strides = [1, 1]} : vector<8x64xf32> to vector<8x32xf32>
    %422 = vector.extract_strided_slice %420 {offsets = [0, 32], sizes = [8, 32], strides = [1, 1]} : vector<8x64xf32> to vector<8x32xf32>
    %423 = vector.extract_strided_slice %410 {offsets = [0, 64], sizes = [8, 32], strides = [1, 1]} : vector<8x96xf32> to vector<8x32xf32>
    %424 = vector.extract_strided_slice %412 {offsets = [0, 64], sizes = [8, 32], strides = [1, 1]} : vector<8x96xf32> to vector<8x32xf32>
    %425 = vector.broadcast %24 : vector<1x32xf32> to vector<8x32xf32>
    %426 = arith.addf %424, %425 : vector<8x32xf32>
    %427 = arith.mulf %421, %426 : vector<8x32xf32>
    %428 = arith.addf %423, %427 : vector<8x32xf32>
    %429 = math.tanh %428 : vector<8x32xf32>
    %cst_75 = arith.constant 1.000000e+00 : f32
    %430 = vector.broadcast %cst_75 : f32 to vector<8x32xf32>
    %431 = arith.subf %430, %422 : vector<8x32xf32>
    %432 = arith.mulf %431, %429 : vector<8x32xf32>
    %433 = arith.mulf %422, %377 : vector<8x32xf32>
    %434 = arith.addf %432, %433 : vector<8x32xf32>
    %435 = vector.shape_cast %42 : vector<8x1xi1> to vector<8x1xi1>
    %436 = vector.broadcast %435 : vector<8x1xi1> to vector<8x32xi1>
    %437 = arith.select %436, %434, %377 : vector<8x32xi1>, vector<8x32xf32>
    %438 = vector.extract_strided_slice %29 {offsets = [7, 0, 0], sizes = [1, 8, 96], strides = [1, 1, 1]} : vector<8x8x96xf32> to vector<1x8x96xf32>
    %439 = vector.shape_cast %438 : vector<1x8x96xf32> to vector<8x96xf32>
    %440 = arith.truncf %406 : vector<8x32xf32> to vector<8x32xbf16>
    %cst_76 = arith.constant dense<0.000000e+00> : vector<8x96xf32>
    %441 = tpu.matmul %440, %14, %cst_76 {dimension_numbers = #tpu.dot_dimension_numbers<[1], [0], [0], [1], [0, 0, 1, 1], [], []>} : vector<8x32xbf16>, vector<32x96xbf16>, vector<8x96xf32> -> vector<8x96xf32>
    %442 = vector.extract_strided_slice %439 {offsets = [0, 0], sizes = [8, 64], strides = [1, 1]} : vector<8x96xf32> to vector<8x64xf32>
    %443 = vector.extract_strided_slice %441 {offsets = [0, 0], sizes = [8, 64], strides = [1, 1]} : vector<8x96xf32> to vector<8x64xf32>
    %444 = arith.addf %442, %443 : vector<8x64xf32>
    %445 = arith.negf %444 : vector<8x64xf32>
    %446 = math.exp %445 : vector<8x64xf32>
    %cst_77 = arith.constant 1.000000e+00 : f32
    %447 = vector.broadcast %cst_77 : f32 to vector<8x64xf32>
    %448 = arith.addf %447, %446 : vector<8x64xf32>
    %449 = arith.divf %447, %448 : vector<8x64xf32>
    %450 = vector.extract_strided_slice %449 {offsets = [0, 0], sizes = [8, 32], strides = [1, 1]} : vector<8x64xf32> to vector<8x32xf32>
    %451 = vector.extract_strided_slice %449 {offsets = [0, 32], sizes = [8, 32], strides = [1, 1]} : vector<8x64xf32> to vector<8x32xf32>
    %452 = vector.extract_strided_slice %439 {offsets = [0, 64], sizes = [8, 32], strides = [1, 1]} : vector<8x96xf32> to vector<8x32xf32>
    %453 = vector.extract_strided_slice %441 {offsets = [0, 64], sizes = [8, 32], strides = [1, 1]} : vector<8x96xf32> to vector<8x32xf32>
    %454 = vector.broadcast %22 : vector<1x32xf32> to vector<8x32xf32>
    %455 = arith.addf %453, %454 : vector<8x32xf32>
    %456 = arith.mulf %450, %455 : vector<8x32xf32>
    %457 = arith.addf %452, %456 : vector<8x32xf32>
    %458 = math.tanh %457 : vector<8x32xf32>
    %cst_78 = arith.constant 1.000000e+00 : f32
    %459 = vector.broadcast %cst_78 : f32 to vector<8x32xf32>
    %460 = arith.subf %459, %451 : vector<8x32xf32>
    %461 = arith.mulf %460, %458 : vector<8x32xf32>
    %462 = arith.mulf %451, %406 : vector<8x32xf32>
    %463 = arith.addf %461, %462 : vector<8x32xf32>
    %464 = vector.shape_cast %46 : vector<8x1xi1> to vector<8x1xi1>
    %465 = vector.broadcast %464 : vector<8x1xi1> to vector<8x32xi1>
    %466 = arith.select %465, %463, %406 : vector<8x32xi1>, vector<8x32xf32>
    %467 = arith.truncf %406 : vector<8x32xf32> to vector<8x32xbf16>
    %cst_79 = arith.constant dense<0.000000e+00> : vector<8x96xf32>
    %468 = tpu.matmul %467, %12, %cst_79 {dimension_numbers = #tpu.dot_dimension_numbers<[1], [0], [0], [1], [0, 0, 1, 1], [], []>} : vector<8x32xbf16>, vector<32x96xbf16>, vector<8x96xf32> -> vector<8x96xf32>
    %469 = vector.broadcast %20 : vector<1x96xf32> to vector<8x96xf32>
    %470 = arith.addf %468, %469 : vector<8x96xf32>
    %471 = arith.truncf %437 : vector<8x32xf32> to vector<8x32xbf16>
    %cst_80 = arith.constant dense<0.000000e+00> : vector<8x96xf32>
    %472 = tpu.matmul %471, %16, %cst_80 {dimension_numbers = #tpu.dot_dimension_numbers<[1], [0], [0], [1], [0, 0, 1, 1], [], []>} : vector<8x32xbf16>, vector<32x96xbf16>, vector<8x96xf32> -> vector<8x96xf32>
    %473 = vector.extract_strided_slice %470 {offsets = [0, 0], sizes = [8, 64], strides = [1, 1]} : vector<8x96xf32> to vector<8x64xf32>
    %474 = vector.extract_strided_slice %472 {offsets = [0, 0], sizes = [8, 64], strides = [1, 1]} : vector<8x96xf32> to vector<8x64xf32>
    %475 = arith.addf %473, %474 : vector<8x64xf32>
    %476 = arith.negf %475 : vector<8x64xf32>
    %477 = math.exp %476 : vector<8x64xf32>
    %cst_81 = arith.constant 1.000000e+00 : f32
    %478 = vector.broadcast %cst_81 : f32 to vector<8x64xf32>
    %479 = arith.addf %478, %477 : vector<8x64xf32>
    %480 = arith.divf %478, %479 : vector<8x64xf32>
    %481 = vector.extract_strided_slice %480 {offsets = [0, 0], sizes = [8, 32], strides = [1, 1]} : vector<8x64xf32> to vector<8x32xf32>
    %482 = vector.extract_strided_slice %480 {offsets = [0, 32], sizes = [8, 32], strides = [1, 1]} : vector<8x64xf32> to vector<8x32xf32>
    %483 = vector.extract_strided_slice %470 {offsets = [0, 64], sizes = [8, 32], strides = [1, 1]} : vector<8x96xf32> to vector<8x32xf32>
    %484 = vector.extract_strided_slice %472 {offsets = [0, 64], sizes = [8, 32], strides = [1, 1]} : vector<8x96xf32> to vector<8x32xf32>
    %485 = vector.broadcast %24 : vector<1x32xf32> to vector<8x32xf32>
    %486 = arith.addf %484, %485 : vector<8x32xf32>
    %487 = arith.mulf %481, %486 : vector<8x32xf32>
    %488 = arith.addf %483, %487 : vector<8x32xf32>
    %489 = math.tanh %488 : vector<8x32xf32>
    %cst_82 = arith.constant 1.000000e+00 : f32
    %490 = vector.broadcast %cst_82 : f32 to vector<8x32xf32>
    %491 = arith.subf %490, %482 : vector<8x32xf32>
    %492 = arith.mulf %491, %489 : vector<8x32xf32>
    %493 = arith.mulf %482, %437 : vector<8x32xf32>
    %494 = arith.addf %492, %493 : vector<8x32xf32>
    %495 = vector.shape_cast %44 : vector<8x1xi1> to vector<8x1xi1>
    %496 = vector.broadcast %495 : vector<8x1xi1> to vector<8x32xi1>
    %497 = arith.select %496, %494, %437 : vector<8x32xi1>, vector<8x32xf32>
    %498 = arith.truncf %466 : vector<8x32xf32> to vector<8x32xbf16>
    %cst_83 = arith.constant dense<0.000000e+00> : vector<8x96xf32>
    %499 = tpu.matmul %498, %12, %cst_83 {dimension_numbers = #tpu.dot_dimension_numbers<[1], [0], [0], [1], [0, 0, 1, 1], [], []>} : vector<8x32xbf16>, vector<32x96xbf16>, vector<8x96xf32> -> vector<8x96xf32>
    %500 = vector.broadcast %20 : vector<1x96xf32> to vector<8x96xf32>
    %501 = arith.addf %499, %500 : vector<8x96xf32>
    %502 = arith.truncf %497 : vector<8x32xf32> to vector<8x32xbf16>
    %cst_84 = arith.constant dense<0.000000e+00> : vector<8x96xf32>
    %503 = tpu.matmul %502, %16, %cst_84 {dimension_numbers = #tpu.dot_dimension_numbers<[1], [0], [0], [1], [0, 0, 1, 1], [], []>} : vector<8x32xbf16>, vector<32x96xbf16>, vector<8x96xf32> -> vector<8x96xf32>
    %504 = vector.extract_strided_slice %501 {offsets = [0, 0], sizes = [8, 64], strides = [1, 1]} : vector<8x96xf32> to vector<8x64xf32>
    %505 = vector.extract_strided_slice %503 {offsets = [0, 0], sizes = [8, 64], strides = [1, 1]} : vector<8x96xf32> to vector<8x64xf32>
    %506 = arith.addf %504, %505 : vector<8x64xf32>
    %507 = arith.negf %506 : vector<8x64xf32>
    %508 = math.exp %507 : vector<8x64xf32>
    %cst_85 = arith.constant 1.000000e+00 : f32
    %509 = vector.broadcast %cst_85 : f32 to vector<8x64xf32>
    %510 = arith.addf %509, %508 : vector<8x64xf32>
    %511 = arith.divf %509, %510 : vector<8x64xf32>
    %512 = vector.extract_strided_slice %511 {offsets = [0, 0], sizes = [8, 32], strides = [1, 1]} : vector<8x64xf32> to vector<8x32xf32>
    %513 = vector.extract_strided_slice %511 {offsets = [0, 32], sizes = [8, 32], strides = [1, 1]} : vector<8x64xf32> to vector<8x32xf32>
    %514 = vector.extract_strided_slice %501 {offsets = [0, 64], sizes = [8, 32], strides = [1, 1]} : vector<8x96xf32> to vector<8x32xf32>
    %515 = vector.extract_strided_slice %503 {offsets = [0, 64], sizes = [8, 32], strides = [1, 1]} : vector<8x96xf32> to vector<8x32xf32>
    %516 = vector.broadcast %24 : vector<1x32xf32> to vector<8x32xf32>
    %517 = arith.addf %515, %516 : vector<8x32xf32>
    %518 = arith.mulf %512, %517 : vector<8x32xf32>
    %519 = arith.addf %514, %518 : vector<8x32xf32>
    %520 = math.tanh %519 : vector<8x32xf32>
    %cst_86 = arith.constant 1.000000e+00 : f32
    %521 = vector.broadcast %cst_86 : f32 to vector<8x32xf32>
    %522 = arith.subf %521, %513 : vector<8x32xf32>
    %523 = arith.mulf %522, %520 : vector<8x32xf32>
    %524 = arith.mulf %513, %497 : vector<8x32xf32>
    %525 = arith.addf %523, %524 : vector<8x32xf32>
    %526 = vector.shape_cast %46 : vector<8x1xi1> to vector<8x1xi1>
    %527 = vector.broadcast %526 : vector<8x1xi1> to vector<8x32xi1>
    %528 = arith.select %527, %525, %497 : vector<8x32xi1>, vector<8x32xf32>
    %c0_87 = arith.constant 0 : index
    %c0_88 = arith.constant 0 : index
    %529 = vector.load %arg7[%c0_87, %c0_88] : memref<32x4xf32, #tpu.memory_space<vmem>>, vector<32x4xf32>
    %cst_89 = arith.constant dense<0.000000e+00> : vector<8x4xf32>
    %530 = tpu.matmul %528, %529, %cst_89 {dimension_numbers = #tpu.dot_dimension_numbers<[1], [0], [0], [1], [0, 0, 1, 1], [], []>} : vector<8x32xf32>, vector<32x4xf32>, vector<8x4xf32> -> vector<8x4xf32>
    %c0_90 = arith.constant 0 : index
    %c0_91 = arith.constant 0 : index
    %531 = vector.load %arg8[%c0_90, %c0_91] : memref<1x4xf32, #tpu.memory_space<vmem>>, vector<1x4xf32>
    %532 = vector.broadcast %531 : vector<1x4xf32> to vector<8x4xf32>
    %533 = arith.addf %530, %532 : vector<8x4xf32>
    %c0_92 = arith.constant 0 : index
    %c0_93 = arith.constant 0 : index
    %534 = vector.load %arg9[%c0_92, %c0_93] : memref<8x4xf32, #tpu.memory_space<vmem>>, vector<8x4xf32>
    tpu.vector_store %arg9[%c0_92, %c0_93], %533 {strides = array<i32>} : memref<8x4xf32, #tpu.memory_space<vmem>>, vector<8x4xf32>,
    return
  }
}

</mosaic_0001>

<bundles_post_ra>
// kernel: gru_forward.1
= control target key start
LH: loop header
LB: loop body
LE: loop exit
PB: predicated region body
PF: predicated region fallthrough
CT: control target
= control target key end

     0   :  { %v2611_v0 = vmov 0   ;;  %v2612_v17 = vmov 0.0   ;;  %v41_v18 = vlaneseq  ;;  %vm99_vm0 = vcmask 523264   ;;  %s2614_s28 = smov 64   ;;  %s2615_s16 = smov 96   ;;  %s3271_s0 = inlined_call_operand.vmem [shape: s32[64,1], index: 0, kind: input, shape index: {}]   ;;  %s3272_s2 = inlined_call_operand.vmem [shape: f32[64,32], index: 2, kind: input, shape index: {}]   ;;  %s3273_s3 = inlined_call_operand.vmem [shape: bf16[2,32,96], index: 3, kind: input, shape index: {}]   ;;  %s3274_s4 = inlined_call_operand.vmem [shape: bf16[2,32,96], index: 4, kind: input, shape index: {}]   ;;  %s3275_s6 = inlined_call_operand.vmem [shape: f32[2,1,32], index: 6, kind: input, shape index: {}]   ;;  %s3276_s5 = inlined_call_operand.vmem [shape: f32[2,1,96], index: 5, kind: input, shape index: {}]   ;;  %s3277_s1 = inlined_call_operand.vmem [shape: s32[8,1], index: 1, kind: input, shape index: {}]   ;;  %s3278_s7 = inlined_call_operand.vmem [shape: f32[32,4], index: 7, kind: input, shape index: {}]   ;;  %s3279_s8 = inlined_call_operand.vmem [shape: f32[1,4], index: 8, kind: input, shape index: {}]   ;;  %s3280_s9 = inlined_call_operand.vmem [shape: f32[8,4], index: 9, kind: output, shape index: {}]  }
   0x1   :  { %2498 = vset.pattern.permute.xlu1 %v2611_v0  ;;  %2497 = vset.pattern.permute.xlu0 %v2611_v0  ;;  %v35_v1 = vld [vmem:[%s3271_s0 + $0x10] sm:$0xff]  ;;  %v33_v2 = vld [vmem:[%s3271_s0] sm:$0xff]  ;;  %v36_v3 = vld [vmem:[%s3271_s0 + $0x18] sm:$0xff]  ;;  %vm2613_vm9 = vmmov 0   ;;  %vm275_vm10 = vcmask 261120  }
   0x2   :  { %50 = vperm.xlu1 %2498, %v35_v1   ;;  %44 = vperm.xlu0 %2497, %v33_v2   ;;  %v34_v4 = vld [vmem:[%s3271_s0 + $0x8] sm:$0xff]  ;;  %v98_v5 = vld [vmem:[%s3272_s2 + $0x38] sm:$0xff]  ;;  %v97_v6 = vld [vmem:[%s3272_s2 + $0x30] sm:$0xff]  ;;  %v42_v19 = vand.u32 127, %v41_v18 }
   0x3   :  { %2249 = vmatprep.subr.mxu0 %v98_v5  ;;  %v96_v7 = vld [vmem:[%s3272_s2 + $0x28] sm:$0xff]  ;;  %v37_v9 = vld [vmem:[%s3271_s0 + $0x20] sm:$0xff]  ;;  %v40_v11 = vld [vmem:[%s3271_s0 + $0x38] sm:$0xff] }
   0x4   :  { %2250 = vmatpush3.msra.mxu0 %v98_v5  ;;  %v38_v8 = vld [vmem:[%s3271_s0 + $0x28] sm:$0xff]  ;;  %v95_v10 = vld [vmem:[%s3272_s2 + $0x20] sm:$0xff]  ;;  %v39_v12 = vld [vmem:[%s3271_s0 + $0x30] sm:$0xff] }
   0x5   :  { %2251 = vmatprep.subr.mxu0 %v97_v6  ;;  %v94_v13 = vld [vmem:[%s3272_s2 + $0x18] sm:$0xff]  ;;  %v93_v14 = vld [vmem:[%s3272_s2 + $0x10] sm:$0xff]  ;;  %v92_v15 = vld [vmem:[%s3272_s2 + $0x8] sm:$0xff] }
   0x6   :  { %53 = vperm.xlu1 %2498, %v36_v3   ;;  %47 = vperm.xlu0 %2497, %v34_v4   ;;  %v91_v16 = vld [vmem:[%s3272_s2] sm:$0xff]  ;;  %v2499_v36 = vld [vmem:[%s3273_s3 + $0x8] sm:$0xff]  }
   0x7   :  { %2252 = vmatpush3.msra.mxu0 %v97_v6  ;;  %2277 = vmatprep.subr.bf16.mxu1 %v2499_v36  ;;  %v2500_v37 = vld [vmem:[%s3273_s3] sm:$0xff]   ;;  %v2743_v38 = vld [vmem:[%s3274_s4 + $0x8] sm:$0xff]  }
   0x8   :  { %2253 = vmatprep.subr.mxu0 %v96_v7  ;;  %2278 = vmatpush3.bf16.msra.mxu1 %v2499_v36  ;;  %v2750_v39 = vld [vmem:[%s3274_s4] sm:$0xff]  }
   0x9   :  { %2254 = vmatpush3.msra.mxu0 %v96_v7  ;;  %2279 = vmatprep.subr.bf16.mxu1 %v2500_v37  ;;  %v2104_v40 = vld [vmem:[%s3275_s6] ss:$0 sm:$0xff] }
   0xa   :  { %59 = vperm.xlu1 %2498, %v38_v8   ;;  %56 = vperm.xlu0 %2497, %v37_v9   ;;  %v2094_v53 = vld [vmem:[%s3276_s5] ss:$0 sm:$0xff] }
   0xb   :  { %2255 = vmatprep.subr.mxu0 %v95_v10  ;;  %v2793_v6 = vld [vmem:[%s3277_s1] sm:$0xff] }
   0xc   :  { %2256 = vmatpush3.msra.mxu0 %v95_v10  ;;  %2280 = vmatpush3.bf16.msra.mxu1 %v2500_v37  ;;  %vm354_vm11 = vcmp.gt.s32.totalorder %v2793_v6, 0  ;;  %v2834_v37 = vld [vmem:[%s3274_s4 + $0x18] sm:$0xff]   ;;  %vm355_vm13 = vcmp.gt.s32.totalorder %v2793_v6, 1  ;;  %vm356_vm15 = vcmp.gt.s32.totalorder %v2793_v6, 2 }
   0xd   :  { %2257 = vmatprep.subr.mxu0 %v94_v13  ;;  %2289 = vmatprep.subr.bf16.mxu1 %v2612_v17 }
   0xe   :  { %65 = vperm.xlu1 %2498, %v40_v11   ;;  %62 = vperm.xlu0 %2497, %v39_v12   ;;  %v452_v12 = vsel %vm354_vm11, 1, %v2611_v0 }
   0xf   :  { %2258 = vmatpush3.msra.mxu0 %v94_v13 }
  0x10   :  { %2259 = vmatprep.subr.mxu0 %v93_v14 }
  0x11   :  { %2260 = vmatpush3.msra.mxu0 %v93_v14 }
  0x12   :  { %2261 = vmatprep.subr.mxu0 %v92_v15  ;;  %429 = vrot.lane.b32.xlu0 %v2104_v40, %s2614_s28 }
  0x13   :  { %2262 = vmatpush3.msra.mxu0 %v92_v15 }
  0x14   :  { %2263 = vmatprep.subr.mxu0 %v91_v16 }
  0x15   :  { %2264 = vmatpush3.msra.mxu0 %v91_v16 }
  0x16   :  { %2297 = vmatprep.subr.bf16.mxu0 %v2612_v17 }
  0x7d   :  { %v51_v20 = vpop.permute.xlu1 %50  ;;  %v45_v21 = vpop.permute.xlu0 %44 }
  0x7e   :  { %vm67_vm1 = vcmp.eq.s32.totalorder %v45_v21, %v42_v19  ;;  %vm69_vm2 = vcmp.eq.s32.totalorder %v51_v20, %v42_v19 }
  0x7f   :  { %v2068_v22 = vsel %vm67_vm1, 1.0, %v2612_v17  ;;  %v2070_v25 = vsel %vm69_vm2, 1.0, %v2612_v17  ;;  %vm357_vm1 = vcmp.gt.s32.totalorder %v2793_v6, 3 }
  0x80   :  { %2265 = vmatprep.mubr.msk.f32.mxu0 %vm99_vm0, %v2068_v22 }
  0x81   :  { %v54_v23 = vpop.permute.xlu1 %53  ;;  %v48_v24 = vpop.permute.xlu0 %47 }
  0x82   :  { %vm68_vm3 = vcmp.eq.s32.totalorder %v48_v24, %v42_v19  ;;  %vm70_vm4 = vcmp.eq.s32.totalorder %v54_v23, %v42_v19 }
  0x83   :  { %v2069_v26 = vsel %vm68_vm3, 1.0, %v2612_v17  ;;  %v2071_v29 = vsel %vm70_vm4, 1.0, %v2612_v17  ;;  %vm358_vm3 = vcmp.gt.s32.totalorder %v2793_v6, 4 }
  0x84   :  { %2266 = vmatmul.mubr.msk.f32.vlgmr.msra.gmra.mxu0 %vm99_vm0, %v2069_v26  ;;  %v2811_v26 = vld [vmem:[%s3273_s3 + $0x10] sm:$0xff]  }
  0x85   :  { %v60_v27 = vpop.permute.xlu1 %59  ;;  %2268 = vmatprep.mubr.msk.f32.mxu0 %vm99_vm0, %v2070_v25  ;;  %v57_v28 = vpop.permute.xlu0 %56  ;;  %2298 = vmatpush3.bf16.msra.mxu0 %v2743_v38  ;;  %v2805_v25 = vld [vmem:[%s3273_s3 + $0x18] sm:$0xff]  }
  0x86   :  { %vm71_vm5 = vcmp.eq.s32.totalorder %v57_v28, %v42_v19  ;;  %vm72_vm6 = vcmp.eq.s32.totalorder %v60_v27, %v42_v19  ;;  %2299 = vmatprep.subr.bf16.mxu0 %v2612_v17 }
  0x87   :  { %v2072_v30 = vsel %vm71_vm5, 1.0, %v2612_v17  ;;  %v2073_v33 = vsel %vm72_vm6, 1.0, %v2612_v17  ;;  %vm359_vm5 = vcmp.gt.s32.totalorder %v2793_v6, 5 }
  0x88   :  { %2269 = vmatmul.mubr.msk.f32.gmra.mxu0 %vm99_vm0, %v2071_v29 }
  0x89   :  { %v66_v31 = vpop.permute.xlu1 %65  ;;  %2271 = vmatprep.mubr.msk.f32.mxu0 %vm99_vm0, %v2072_v30  ;;  %v63_v32 = vpop.permute.xlu0 %62  ;;  %2300 = vmatpush3.bf16.msra.mxu0 %v2750_v39 }
  0x8a   :  { %vm73_vm7 = vcmp.eq.s32.totalorder %v63_v32, %v42_v19  ;;  %vm74_vm8 = vcmp.eq.s32.totalorder %v66_v31, %v42_v19  ;;  %2313 = vmatprep.subr.bf16.mxu0 %v2612_v17 }
  0x8b   :  { %v2074_v34 = vsel %vm73_vm7, 1.0, %v2612_v17  ;;  %v2075_v35 = vsel %vm74_vm8, 1.0, %v2612_v17 }
  0x8c   :  { %2272 = vmatmul.mubr.msk.f32.gmra.mxu0 %vm99_vm0, %v2073_v33 }
  0x8d   :  { %2274 = vmatprep.mubr.msk.f32.mxu0 %vm99_vm0, %v2074_v34  ;;  %v2788_v5 = vpop.permute.xlu0 %429  ;;  %v2114_v34 = vld [vmem:[%s3275_s6 + $0x1] ss:$0 sm:$0xff] }
  0x90   :  { %2275 = vmatmul.mubr.msk.f32.gmra.mxu0 %vm99_vm0, %v2075_v35 }
  0x91   :  { %2301 = vmatprep.mubr.msk.bf16.mxu0 %vm2613_vm9, %v2612_v17 }
 0x144   :  { %v2267_v41 = vpop.f32.mrf.mxu0 }
 0x146   :  { %v190_v42 = vpop.f32.mrf.mxu0 }
 0x147   :  { %v253_v43 = vpack.c.bf16 %v2267_v41, %v190_v42  ;;  %v2842_v41 = vld [vmem:[%s3274_s4 + $0x10] sm:$0xff]  }
 0x148   :  { %v2270_v44 = vpop.f32.mrf.mxu0 }
 0x149   :  { %2281 = vmatprep.mubr.msk.bf16.mxu1 %vm275_vm10, %v253_v43 }
 0x14a   :  { %v200_v45 = vpop.f32.mrf.mxu0 }
 0x14b   :  { %v254_v46 = vpack.c.bf16 %v2270_v44, %v200_v45 }
 0x14c   :  { %v2273_v47 = vpop.f32.mrf.mxu0 }
 0x14d   :  { %2282 = vmatmul.mubr.msk.bf16.vlgmr.msra.gmra.mxu1 %vm275_vm10, %v254_v46 }
 0x14e   :  { %2290 = vmatpush3.bf16.msra.mxu1 %v2743_v38  ;;  %v210_v48 = vpop.f32.mrf.mxu0 }
 0x14f   :  { %v255_v49 = vpack.c.bf16 %v2273_v47, %v210_v48  ;;  %2291 = vmatprep.subr.bf16.mxu1 %v2612_v17 }
 0x150   :  { %v2276_v50 = vpop.f32.mrf.mxu0 }
 0x151   :  { %2285 = vmatprep.mubr.msk.bf16.mxu1 %vm275_vm10, %v255_v49 }
 0x152   :  { %v220_v51 = vpop.f32.mrf.mxu0  ;;  %2292 = vmatpush3.bf16.msra.mxu1 %v2750_v39 }
 0x153   :  { %v256_v52 = vpack.c.bf16 %v2276_v50, %v220_v51  ;;  %2305 = vmatprep.subr.bf16.mxu1 %v2612_v17 }
 0x155   :  { %2286 = vmatmul.mubr.msk.bf16.gmra.mxu1 %vm275_vm10, %v256_v52 }
 0x156   :  { %2293 = vmatprep.mubr.msk.bf16.mxu1 %vm2613_vm9, %v2612_v17 }
 0x15d   :  { %2294 = vmatmul.mubr.bf16.vlgmr.msra.gmra.mxu1 %v2611_v0 }
 0x15e   :  { %2309 = vmatprep.mubr.msk.bf16.mxu1 %vm2613_vm9, %v2612_v17  ;;  %2306 = vmatpush3.bf16.msra.mxu1 %v2805_v25 }
 0x15f   :  { %2307 = vmatprep.subr.bf16.mxu1 %v2612_v17 }
 0x162   :  { %2308 = vmatpush3.bf16.msra.mxu1 %v2811_v26 }
 0x163   :  { %2321 = vmatprep.subr.bf16.mxu1 %v2612_v17 }
 0x20d   :  { %v2283_v54 = vpop.f32.mrf.mxu1 }
 0x20e   :  { %v2776_v55 = vadd.f32 %v2283_v54, %v2094_v53 }
 0x20f   :  { %v322_v56 = vpop.f32.mrf.mxu1 }
 0x210   :  { %v323_v14 = vadd.f32 %v2094_v53, %v322_v56 }
 0x211   :  { %v2284_v57 = vpop.f32.mrf.mxu1 }
 0x212   :  { %v2778_v58 = vadd.f32 %v2284_v57, %v2094_v53 }
 0x213   :  { %v325_v59 = vpop.f32.mrf.mxu1 }
 0x214   :  { %v2780_v60 = vadd.f32 %v2094_v53, %v325_v59 }
 0x215   :  { %v2287_v61 = vpop.f32.mrf.mxu1 }
 0x216   :  { %v2782_v62 = vadd.f32 %v2287_v61, %v2094_v53  ;;  %v2872_v61 = vld [vmem:[%s3276_s5 + $0x1] ss:$0 sm:$0xff] }
 0x217   :  { %v338_v63 = vpop.f32.mrf.mxu1 }
 0x218   :  { %v2784_v1 = vadd.f32 %v2094_v53, %v338_v63 }
 0x219   :  { %v2288_v2 = vpop.f32.mrf.mxu1 }
 0x21a   :  { %v2786_v3 = vadd.f32 %v2288_v2, %v2094_v53 }
 0x21b   :  { %v341_v4 = vpop.f32.mrf.mxu1 }
 0x21c   :  { %v2795_v7 = vadd.f32 %v2094_v53, %v341_v4 }
 0x21d   :  { %v411_v8 = vpop.f32.mrf.mxu1 }
 0x21e   :  { %v432_v9 = vadd.f32 %v2788_v5, %v411_v8  ;;  %v417_v15 = vadd.f32 %v411_v8, %v323_v14 }
 0x21f   :  { %v2295_v10 = vpop.f32.mrf.mxu1 }
 0x220   :  { %434 = vrot.lane.b32.xlu1 %v432_v9, %s2614_s28  ;;  %v2103_v16 = vmul.f32 -1.442695, %v417_v15 }
 0x221   :  { %v414_v11 = vpop.f32.mrf.mxu1 }
 0x222   :  { %2507 = vpow2.f32 %v2103_v16  ;;  %v532_v16 = vsel %vm355_vm13, 1, %v2611_v0 }
 0x223   :  { %v2296_v13 = vpop.f32.mrf.mxu1 }
 0x224   :  { %454 = vperm.xlu1 %2498, %v452_v12  }
 0x22f   :  { %v2508_v18 = vpop.eup %2507 }
 0x230   :  { %v421_v19 = vadd.f32 1.0, %v2508_v18 }
 0x232   :  { %2509 = vrcp.f32 %v421_v19 }
 0x23f   :  { %v2510_v20 = vpop.eup %2509 }
 0x240   :  { %v444_v28 = vsub.f32 1.0, %v2510_v20  ;;  %v450_v31 = vmul.f32 0.0, %v2510_v20 }
 0x292   :  { %v435_v21 = vpop.permute.xlu1 %434 }
 0x293   :  { %v437_v22 = vmul.f32 %v2510_v20, %v435_v21 }
 0x295   :  { %439 = vrot.lane.b32.xlu0 %v437_v22, %s2614_s28 }
 0x29f   :  { %v2817_v30 = vpop.permute.xlu1 %454 }
 0x2a0   :  { %vm456_vm12 = vcmp.eq.s32.totalorder %v2817_v30, 1 }
 0x307   :  { %v440_v23 = vpop.permute.xlu0 %439 }
 0x308   :  { %v442_v24 = vadd.f32 %v440_v23, %v323_v14 }
 0x30a   :  { %2511 = vtanh.f32 %v442_v24 }
 0x317   :  { %v2512_v27 = vpop.eup %2511 }
 0x318   :  { %446 = vrot.lane.b32.xlu0 %v2512_v27, %s2615_s16 }
 0x31c   :  { %660 = vrot.lane.b32.xlu0 %v2114_v34, %s2614_s28 }
 0x38a   :  { %v447_v29 = vpop.permute.xlu0 %446 }
 0x38b   :  { %v449_v32 = vmul.f32 %v447_v29, %v444_v28 }
 0x38d   :  { %v451_v33 = vadd.f32 %v450_v31, %v449_v32 }
 0x38e   :  { %v2864_v49 = vpop.permute.xlu0 %660 }
 0x38f   :  { %v2826_v35 = vsel %vm456_vm12, %v451_v33, 0.0 }
 0x390   :  { %v458_v36 = vpack.c.bf16 %v2826_v35, %v2826_v35 }
 0x392   :  { %460 = vrot.lane.b32.xlu1 %v458_v36, %s2615_s16 }
 0x404   :  { %v461_v40 = vpop.permute.xlu1 %460 }
 0x405   :  { %2302 = vmatmul.mubr.msk.bf16.vlgmr.msra.gmra.mxu0 %vm275_vm10, %v461_v40  ;;  %2310 = vmatmul.mubr.msk.bf16.vlgmr.msra.gmra.mxu1 %vm275_vm10, %v461_v40 }
 0x406   :  { %2314 = vmatpush3.bf16.msra.mxu0 %v2834_v37  ;;  %2317 = vmatprep.mubr.msk.bf16.mxu0 %vm2613_vm9, %v2612_v17 }
 0x407   :  { %2315 = vmatprep.subr.bf16.mxu0 %v2612_v17  ;;  %2322 = vmatpush3.bf16.msra.mxu1 %v2743_v38 }
 0x408   :  { %2323 = vmatprep.subr.bf16.mxu1 %v2612_v17  ;;  %2325 = vmatprep.mubr.msk.bf16.mxu1 %vm2613_vm9, %v2612_v17 }
 0x40a   :  { %2316 = vmatpush3.bf16.msra.mxu0 %v2842_v41 }
 0x40b   :  { %2329 = vmatprep.subr.bf16.mxu0 %v2612_v17  ;;  %2324 = vmatpush3.bf16.msra.mxu1 %v2750_v39 }
 0x40c   :  { %2337 = vmatprep.subr.bf16.mxu1 %v2612_v17 }
 0x40d   :  { %2318 = vmatmul.mubr.bf16.vlgmr.msra.gmra.mxu0 %v2611_v0 }
 0x40e   :  { %2330 = vmatpush3.bf16.msra.mxu0 %v2805_v25  ;;  %2333 = vmatprep.mubr.msk.bf16.mxu0 %vm2613_vm9, %v2612_v17 }
 0x40f   :  { %2331 = vmatprep.subr.bf16.mxu0 %v2612_v17 }
 0x412   :  { %2332 = vmatpush3.bf16.msra.mxu0 %v2811_v26 }
 0x413   :  { %2345 = vmatprep.subr.bf16.mxu0 %v2612_v17 }
 0x4c5   :  { %v499_v42 = vpop.f32.mrf.mxu0  ;;  %v590_v43 = vpop.f32.mrf.mxu1 }
 0x4c6   :  { %v512_v44 = vadd.f32 %v499_v42, %v2788_v5  ;;  %v505_v59 = vadd.f32 %v499_v42, %v2780_v60  ;;  %v591_v2 = vadd.f32 %v2872_v61, %v590_v43 }
 0x4c7   :  { %v2303_v45 = vpop.f32.mrf.mxu0  ;;  %v2311_v46 = vpop.f32.mrf.mxu1 }
 0x4c8   :  { %514 = vrot.lane.b32.xlu1 %v512_v44, %s2614_s28  ;;  %v2106_v63 = vmul.f32 -1.442695, %v505_v59 }
 0x4c9   :  { %v502_v47 = vpop.f32.mrf.mxu0  ;;  %v593_v48 = vpop.f32.mrf.mxu1 }
 0x4ca   :  { %2513 = vpow2.f32 %v2106_v63 }
 0x4cb   :  { %v2304_v50 = vpop.f32.mrf.mxu0  ;;  %v2312_v51 = vpop.f32.mrf.mxu1 }
 0x4cd   :  { %v642_v52 = vpop.f32.mrf.mxu0 }
 0x4ce   :  { %v663_v53 = vadd.f32 %v2864_v49, %v642_v52  ;;  %v648_v4 = vadd.f32 %v642_v52, %v591_v2 }
 0x4cf   :  { %v2319_v54 = vpop.f32.mrf.mxu0 }
 0x4d0   :  { %665 = vrot.lane.b32.xlu0 %v663_v53, %s2614_s28  ;;  %v2113_v8 = vmul.f32 -1.442695, %v648_v4 }
 0x4d1   :  { %v645_v56 = vpop.f32.mrf.mxu0 }
 0x4d2   :  { %2515 = vpow2.f32 %v2113_v8 }
 0x4d3   :  { %v2320_v57 = vpop.f32.mrf.mxu0 }
 0x4d7   :  { %v2514_v9 = vpop.eup %2513 }
 0x4d8   :  { %v509_v10 = vadd.f32 1.0, %v2514_v9 }
 0x4da   :  { %2517 = vrcp.f32 %v509_v10 }
 0x4df   :  { %v2516_v11 = vpop.eup %2515 }
 0x4e0   :  { %v652_v12 = vadd.f32 1.0, %v2516_v11 }
 0x4e2   :  { %2519 = vrcp.f32 %v652_v12 }
 0x4e7   :  { %v2518_v13 = vpop.eup %2517 }
 0x4e8   :  { %v524_v29 = vsub.f32 1.0, %v2518_v13  ;;  %v530_v33 = vmul.f32 %v2518_v13, %v2826_v35 }
 0x4ef   :  { %v2520_v18 = vpop.eup %2519 }
 0x4f0   :  { %v675_v42 = vsub.f32 1.0, %v2520_v18  ;;  %v681_v44 = vmul.f32 0.0, %v2520_v18 }
 0x53a   :  { %v515_v14 = vpop.permute.xlu1 %514 }
 0x53b   :  { %v517_v15 = vmul.f32 %v2518_v13, %v515_v14 }
 0x53d   :  { %519 = vrot.lane.b32.xlu1 %v517_v15, %s2614_s28 }
 0x541   :  { %534 = vperm.xlu1 %2498, %v532_v16  }
 0x542   :  { %v666_v19 = vpop.permute.xlu0 %665 }
 0x543   :  { %v668_v20 = vmul.f32 %v2520_v18, %v666_v19 }
 0x545   :  { %670 = vrot.lane.b32.xlu0 %v668_v20, %s2614_s28 }
 0x5af   :  { %v520_v21 = vpop.permute.xlu1 %519 }
 0x5b0   :  { %v522_v22 = vadd.f32 %v520_v21, %v2780_v60 }
 0x5b2   :  { %2521 = vtanh.f32 %v522_v22 }
 0x5b7   :  { %v671_v23 = vpop.permute.xlu0 %670 }
 0x5b8   :  { %v673_v24 = vadd.f32 %v671_v23, %v591_v2 }
 0x5ba   :  { %2523 = vtanh.f32 %v673_v24  ;;  %v758_v24 = vsel %vm356_vm15, 1, %v2611_v0 }
 0x5bc   :  { %v2882_v32 = vpop.permute.xlu1 %534 }
 0x5bd   :  { %vm536_vm14 = vcmp.eq.s32.totalorder %v2882_v32, 1 }
 0x5bf   :  { %v2522_v27 = vpop.eup %2521 }
 0x5c0   :  { %526 = vrot.lane.b32.xlu0 %v2522_v27, %s2615_s16 }
 0x5c7   :  { %v2524_v28 = vpop.eup %2523 }
 0x5c8   :  { %677 = vrot.lane.b32.xlu1 %v2524_v28, %s2615_s16 }
 0x632   :  { %v527_v31 = vpop.permute.xlu0 %526 }
 0x633   :  { %v529_v34 = vmul.f32 %v527_v31, %v524_v29 }
 0x635   :  { %v531_v36 = vadd.f32 %v530_v33, %v529_v34 }
 0x637   :  { %v2889_v60 = vsel %vm536_vm14, %v531_v36, %v2826_v35 }
 0x638   :  { %v684_v40 = vpack.c.bf16 %v2889_v60, %v2889_v60 }
 0x63a   :  { %v678_v43 = vpop.permute.xlu1 %677  ;;  %686 = vrot.lane.b32.xlu0 %v684_v40, %s2615_s16 }
 0x63b   :  { %v680_v45 = vmul.f32 %v678_v43, %v675_v42 }
 0x63d   :  { %v682_v46 = vadd.f32 %v681_v44, %v680_v45 }
 0x63f   :  { %v2896_v47 = vsel %vm456_vm12, %v682_v46, 0.0 }
 0x640   :  { %v804_v48 = vpack.c.bf16 %v2896_v47, %v2896_v47 }
 0x642   :  { %806 = vrot.lane.b32.xlu1 %v804_v48, %s2615_s16 }
 0x6ac   :  { %v687_v35 = vpop.permute.xlu0 %686 }
 0x6ad   :  { %2326 = vmatmul.mubr.msk.bf16.vlgmr.msra.gmra.mxu1 %vm275_vm10, %v687_v35  ;;  %2334 = vmatmul.mubr.msk.bf16.vlgmr.msra.gmra.mxu0 %vm275_vm10, %v687_v35 }
 0x6ae   :  { %2338 = vmatpush3.bf16.msra.mxu1 %v2834_v37  ;;  %2341 = vmatprep.mubr.msk.bf16.mxu1 %vm2613_vm9, %v2612_v17 }
 0x6af   :  { %2339 = vmatprep.subr.bf16.mxu1 %v2612_v17  ;;  %2346 = vmatpush3.bf16.msra.mxu0 %v2743_v38 }
 0x6b0   :  { %2347 = vmatprep.subr.bf16.mxu0 %v2612_v17  ;;  %2349 = vmatprep.mubr.msk.bf16.mxu0 %vm2613_vm9, %v2612_v17 }
 0x6b2   :  { %2340 = vmatpush3.bf16.msra.mxu1 %v2842_v41 }
 0x6b3   :  { %2353 = vmatprep.subr.bf16.mxu1 %v2612_v17  ;;  %2348 = vmatpush3.bf16.msra.mxu0 %v2750_v39 }
 0x6b4   :  { %v807_v30 = vpop.permute.xlu1 %806  ;;  %2361 = vmatprep.subr.bf16.mxu0 %v2612_v17 }
 0x6b5   :  { %2342 = vmatmul.mubr.msk.bf16.vlgmr.msra.gmra.mxu1 %vm275_vm10, %v807_v30 }
 0x6b6   :  { %2354 = vmatpush3.bf16.msra.mxu1 %v2805_v25  ;;  %2357 = vmatprep.mubr.msk.bf16.mxu1 %vm2613_vm9, %v2612_v17 }
 0x6b7   :  { %2355 = vmatprep.subr.bf16.mxu1 %v2612_v17 }
 0x6ba   :  { %2356 = vmatpush3.bf16.msra.mxu1 %v2811_v26 }
 0x6bb   :  { %2369 = vmatprep.subr.bf16.mxu1 %v2612_v17 }
 0x76d   :  { %v725_v50 = vpop.f32.mrf.mxu1  ;;  %v798_v51 = vpop.f32.mrf.mxu0 }
 0x76e   :  { %v738_v52 = vadd.f32 %v725_v50, %v2788_v5  ;;  %v731_v11 = vadd.f32 %v725_v50, %v2776_v55  ;;  %v799_v13 = vadd.f32 %v2872_v61, %v798_v51 }
 0x76f   :  { %v2327_v53 = vpop.f32.mrf.mxu1  ;;  %v2335_v54 = vpop.f32.mrf.mxu0 }
 0x770   :  { %740 = vrot.lane.b32.xlu0 %v738_v52, %s2614_s28  ;;  %v2116_v12 = vmul.f32 -1.442695, %v731_v11 }
 0x771   :  { %v728_v56 = vpop.f32.mrf.mxu1  ;;  %v801_v57 = vpop.f32.mrf.mxu0 }
 0x772   :  { %2525 = vpow2.f32 %v2116_v12 }
 0x773   :  { %v2328_v59 = vpop.f32.mrf.mxu1  ;;  %v2336_v63 = vpop.f32.mrf.mxu0 }
 0x775   :  { %v845_v2 = vpop.f32.mrf.mxu1 }
 0x776   :  { %v858_v4 = vadd.f32 %v845_v2, %v2864_v49  ;;  %v851_v14 = vadd.f32 %v845_v2, %v799_v13 }
 0x777   :  { %v2343_v8 = vpop.f32.mrf.mxu1 }
 0x778   :  { %860 = vrot.lane.b32.xlu1 %v858_v4, %s2614_s28  ;;  %v2119_v15 = vmul.f32 -1.442695, %v851_v14 }
 0x779   :  { %v848_v9 = vpop.f32.mrf.mxu1 }
 0x77a   :  { %2527 = vpow2.f32 %v2119_v15 }
 0x77b   :  { %v2344_v10 = vpop.f32.mrf.mxu1 }
 0x77f   :  { %v2526_v16 = vpop.eup %2525 }
 0x780   :  { %v735_v18 = vadd.f32 1.0, %v2526_v16 }
 0x782   :  { %2529 = vrcp.f32 %v735_v18 }
 0x787   :  { %v2528_v19 = vpop.eup %2527 }
 0x788   :  { %v855_v20 = vadd.f32 1.0, %v2528_v19 }
 0x78a   :  { %2531 = vrcp.f32 %v855_v20 }
 0x78f   :  { %v2530_v21 = vpop.eup %2529 }
 0x790   :  { %v750_v43 = vsub.f32 1.0, %v2530_v21  ;;  %v756_v46 = vmul.f32 %v2530_v21, %v2889_v60 }
 0x797   :  { %v2532_v27 = vpop.eup %2531 }
 0x798   :  { %v870_v50 = vsub.f32 1.0, %v2532_v27  ;;  %v876_v52 = vmul.f32 %v2532_v27, %v2896_v47 }
 0x7e2   :  { %v741_v22 = vpop.permute.xlu0 %740 }
 0x7e3   :  { %v743_v23 = vmul.f32 %v2530_v21, %v741_v22 }
 0x7e5   :  { %745 = vrot.lane.b32.xlu0 %v743_v23, %s2614_s28 }
 0x7e9   :  { %760 = vperm.xlu0 %2497, %v758_v24  }
 0x7ea   :  { %v861_v28 = vpop.permute.xlu1 %860 }
 0x7eb   :  { %v863_v29 = vmul.f32 %v2532_v27, %v861_v28 }
 0x7ed   :  { %865 = vrot.lane.b32.xlu1 %v863_v29, %s2614_s28 }
 0x857   :  { %v746_v31 = vpop.permute.xlu0 %745 }
 0x858   :  { %v748_v33 = vadd.f32 %v746_v31, %v2776_v55 }
 0x85a   :  { %2533 = vtanh.f32 %v748_v33 }
 0x85f   :  { %v866_v34 = vpop.permute.xlu1 %865 }
 0x860   :  { %v868_v36 = vadd.f32 %v866_v34, %v799_v13  ;;  %v953_v34 = vsel %vm357_vm1, 1, %v2611_v0 }
 0x862   :  { %2535 = vtanh.f32 %v868_v36 }
 0x864   :  { %v2935_v45 = vpop.permute.xlu0 %760 }
 0x865   :  { %vm762_vm0 = vcmp.eq.s32.totalorder %v2935_v45, 1 }
 0x867   :  { %v2534_v40 = vpop.eup %2533 }
 0x868   :  { %752 = vrot.lane.b32.xlu1 %v2534_v40, %s2615_s16 }
 0x86f   :  { %v2536_v42 = vpop.eup %2535 }
 0x870   :  { %872 = vrot.lane.b32.xlu0 %v2536_v42, %s2615_s16 }
 0x8da   :  { %v753_v44 = vpop.permute.xlu1 %752 }
 0x8db   :  { %v755_v48 = vmul.f32 %v753_v44, %v750_v43 }
 0x8dd   :  { %v757_v35 = vadd.f32 %v756_v46, %v755_v48 }
 0x8df   :  { %v2942_v55 = vsel %vm762_vm0, %v757_v35, %v2889_v60 }
 0x8e0   :  { %v879_v30 = vpack.c.bf16 %v2942_v55, %v2942_v55 }
 0x8e2   :  { %v873_v51 = vpop.permute.xlu0 %872  ;;  %881 = vrot.lane.b32.xlu1 %v879_v30, %s2615_s16 }
 0x8e3   :  { %v875_v53 = vmul.f32 %v873_v51, %v870_v50 }
 0x8e5   :  { %v877_v54 = vadd.f32 %v876_v52, %v875_v53 }
 0x8e7   :  { %v2951_v56 = vsel %vm536_vm14, %v877_v54, %v2896_v47 }
 0x8e8   :  { %v999_v60 = vpack.c.bf16 %v2951_v56, %v2951_v56 }
 0x8ea   :  { %1001 = vrot.lane.b32.xlu0 %v999_v60, %s2615_s16 }
 0x954   :  { %v882_v57 = vpop.permute.xlu1 %881 }
 0x955   :  { %2350 = vmatmul.mubr.msk.bf16.vlgmr.msra.gmra.mxu0 %vm275_vm10, %v882_v57  ;;  %2358 = vmatmul.mubr.msk.bf16.vlgmr.msra.gmra.mxu1 %vm275_vm10, %v882_v57 }
 0x956   :  { %2362 = vmatpush3.bf16.msra.mxu0 %v2834_v37  ;;  %2365 = vmatprep.mubr.msk.bf16.mxu0 %vm2613_vm9, %v2612_v17 }
 0x957   :  { %2363 = vmatprep.subr.bf16.mxu0 %v2612_v17  ;;  %2370 = vmatpush3.bf16.msra.mxu1 %v2743_v38 }
 0x958   :  { %2371 = vmatprep.subr.bf16.mxu1 %v2612_v17  ;;  %2373 = vmatprep.mubr.msk.bf16.mxu1 %vm2613_vm9, %v2612_v17 }
 0x95a   :  { %2364 = vmatpush3.bf16.msra.mxu0 %v2842_v41 }
 0x95b   :  { %2377 = vmatprep.subr.bf16.mxu0 %v2612_v17  ;;  %2372 = vmatpush3.bf16.msra.mxu1 %v2750_v39 }
 0x95c   :  { %v1002_v32 = vpop.permute.xlu0 %1001  ;;  %2385 = vmatprep.subr.bf16.mxu1 %v2612_v17 }
 0x95d   :  { %2366 = vmatmul.mubr.msk.bf16.vlgmr.msra.gmra.mxu0 %vm275_vm10, %v1002_v32 }
 0x95e   :  { %2378 = vmatpush3.bf16.msra.mxu0 %v2805_v25  ;;  %2381 = vmatprep.mubr.msk.bf16.mxu0 %vm2613_vm9, %v2612_v17 }
 0x95f   :  { %2379 = vmatprep.subr.bf16.mxu0 %v2612_v17 }
 0x962   :  { %2380 = vmatpush3.bf16.msra.mxu0 %v2811_v26 }
 0x963   :  { %2393 = vmatprep.subr.bf16.mxu0 %v2612_v17 }
 0xa15   :  { %v920_v47 = vpop.f32.mrf.mxu0  ;;  %v993_v59 = vpop.f32.mrf.mxu1 }
 0xa16   :  { %v933_v63 = vadd.f32 %v920_v47, %v2788_v5  ;;  %v926_v18 = vadd.f32 %v920_v47, %v2778_v58  ;;  %v994_v20 = vadd.f32 %v2872_v61, %v993_v59 }
 0xa17   :  { %v2351_v2 = vpop.f32.mrf.mxu0  ;;  %v2359_v4 = vpop.f32.mrf.mxu1 }
 0xa18   :  { %935 = vrot.lane.b32.xlu1 %v933_v63, %s2614_s28  ;;  %v2121_v19 = vmul.f32 -1.442695, %v926_v18 }
 0xa19   :  { %v923_v8 = vpop.f32.mrf.mxu0  ;;  %v996_v9 = vpop.f32.mrf.mxu1 }
 0xa1a   :  { %2537 = vpow2.f32 %v2121_v19 }
 0xa1b   :  { %v2352_v10 = vpop.f32.mrf.mxu0  ;;  %v2360_v11 = vpop.f32.mrf.mxu1 }
 0xa1d   :  { %v1040_v12 = vpop.f32.mrf.mxu0 }
 0xa1e   :  { %v1053_v13 = vadd.f32 %v1040_v12, %v2864_v49  ;;  %v1046_v21 = vadd.f32 %v1040_v12, %v994_v20 }
 0xa1f   :  { %v2367_v14 = vpop.f32.mrf.mxu0 }
 0xa20   :  { %1055 = vrot.lane.b32.xlu0 %v1053_v13, %s2614_s28  ;;  %v2124_v22 = vmul.f32 -1.442695, %v1046_v21 }
 0xa21   :  { %v1043_v15 = vpop.f32.mrf.mxu0 }
 0xa22   :  { %2539 = vpow2.f32 %v2124_v22 }
 0xa23   :  { %v2368_v16 = vpop.f32.mrf.mxu0 }
 0xa27   :  { %v2538_v23 = vpop.eup %2537 }
 0xa28   :  { %v930_v24 = vadd.f32 1.0, %v2538_v23 }
 0xa2a   :  { %2541 = vrcp.f32 %v930_v24 }
 0xa2f   :  { %v2540_v27 = vpop.eup %2539 }
 0xa30   :  { %v1050_v28 = vadd.f32 1.0, %v2540_v27 }
 0xa32   :  { %2543 = vrcp.f32 %v1050_v28 }
 0xa37   :  { %v2542_v29 = vpop.eup %2541 }
 0xa38   :  { %v945_v50 = vsub.f32 1.0, %v2542_v29  ;;  %v951_v53 = vmul.f32 %v2542_v29, %v2942_v55 }
 0xa3f   :  { %v2544_v36 = vpop.eup %2543 }
 0xa40   :  { %v1065_v32 = vsub.f32 1.0, %v2544_v36  ;;  %v1071_v59 = vmul.f32 %v2544_v36, %v2951_v56 }
 0xa8a   :  { %v936_v31 = vpop.permute.xlu1 %935 }
 0xa8b   :  { %v938_v33 = vmul.f32 %v2542_v29, %v936_v31 }
 0xa8d   :  { %940 = vrot.lane.b32.xlu1 %v938_v33, %s2614_s28 }
 0xa91   :  { %955 = vperm.xlu1 %2498, %v953_v34  }
 0xa92   :  { %v1056_v40 = vpop.permute.xlu0 %1055 }
 0xa93   :  { %v1058_v42 = vmul.f32 %v2544_v36, %v1056_v40 }
 0xa95   :  { %1060 = vrot.lane.b32.xlu0 %v1058_v42, %s2614_s28 }
 0xaff   :  { %v941_v43 = vpop.permute.xlu1 %940 }
 0xb00   :  { %v943_v44 = vadd.f32 %v941_v43, %v2778_v58 }
 0xb02   :  { %2545 = vtanh.f32 %v943_v44  ;;  %v1148_v44 = vsel %vm358_vm3, 1, %v2611_v0 }
 0xb07   :  { %v1061_v46 = vpop.permute.xlu0 %1060 }
 0xb08   :  { %v1063_v48 = vadd.f32 %v1061_v46, %v994_v20 }
 0xb0a   :  { %2547 = vtanh.f32 %v1063_v48 }
 0xb0c   :  { %v2990_v52 = vpop.permute.xlu1 %955 }
 0xb0d   :  { %vm957_vm2 = vcmp.eq.s32.totalorder %v2990_v52, 1 }
 0xb0f   :  { %v2546_v35 = vpop.eup %2545 }
 0xb10   :  { %947 = vrot.lane.b32.xlu0 %v2546_v35, %s2615_s16 }
 0xb17   :  { %v2548_v30 = vpop.eup %2547 }
 0xb18   :  { %1067 = vrot.lane.b32.xlu1 %v2548_v30, %s2615_s16 }
 0xb82   :  { %v948_v51 = vpop.permute.xlu0 %947 }
 0xb83   :  { %v950_v54 = vmul.f32 %v948_v51, %v945_v50 }
 0xb85   :  { %v952_v60 = vadd.f32 %v951_v53, %v950_v54 }
 0xb87   :  { %v2997_v58 = vsel %vm957_vm2, %v952_v60, %v2942_v55 }
 0xb88   :  { %v1074_v57 = vpack.c.bf16 %v2997_v58, %v2997_v58 }
 0xb8a   :  { %v1068_v47 = vpop.permute.xlu1 %1067  ;;  %1076 = vrot.lane.b32.xlu0 %v1074_v57, %s2615_s16 }
 0xb8b   :  { %v1070_v63 = vmul.f32 %v1068_v47, %v1065_v32 }
 0xb8d   :  { %v1072_v2 = vadd.f32 %v1071_v59, %v1070_v63 }
 0xb8f   :  { %v3006_v4 = vsel %vm762_vm0, %v1072_v2, %v2951_v56 }
 0xb90   :  { %v1194_v55 = vpack.c.bf16 %v3006_v4, %v3006_v4 }
 0xb92   :  { %1196 = vrot.lane.b32.xlu1 %v1194_v55, %s2615_s16 }
 0xbfc   :  { %v1077_v8 = vpop.permute.xlu0 %1076 }
 0xbfd   :  { %2374 = vmatmul.mubr.msk.bf16.vlgmr.msra.gmra.mxu1 %vm275_vm10, %v1077_v8  ;;  %2382 = vmatmul.mubr.msk.bf16.vlgmr.msra.gmra.mxu0 %vm275_vm10, %v1077_v8 }
 0xbfe   :  { %2386 = vmatpush3.bf16.msra.mxu1 %v2834_v37  ;;  %2389 = vmatprep.mubr.msk.bf16.mxu1 %vm2613_vm9, %v2612_v17 }
 0xbff   :  { %2387 = vmatprep.subr.bf16.mxu1 %v2612_v17  ;;  %2394 = vmatpush3.bf16.msra.mxu0 %v2743_v38 }
 0xc00   :  { %2395 = vmatprep.subr.bf16.mxu0 %v2612_v17  ;;  %2397 = vmatprep.mubr.msk.bf16.mxu0 %vm2613_vm9, %v2612_v17 }
 0xc02   :  { %2388 = vmatpush3.bf16.msra.mxu1 %v2842_v41 }
 0xc03   :  { %2401 = vmatprep.subr.bf16.mxu1 %v2612_v17  ;;  %2396 = vmatpush3.bf16.msra.mxu0 %v2750_v39 }
 0xc04   :  { %v1197_v45 = vpop.permute.xlu1 %1196  ;;  %2409 = vmatprep.subr.bf16.mxu0 %v2612_v17 }
 0xc05   :  { %2390 = vmatmul.mubr.msk.bf16.vlgmr.msra.gmra.mxu1 %vm275_vm10, %v1197_v45 }
 0xc06   :  { %2402 = vmatpush3.bf16.msra.mxu1 %v2805_v25  ;;  %2405 = vmatprep.mubr.msk.bf16.mxu1 %vm2613_vm9, %v2612_v17 }
 0xc07   :  { %2403 = vmatprep.subr.bf16.mxu1 %v2612_v17 }
 0xc0a   :  { %2404 = vmatpush3.bf16.msra.mxu1 %v2811_v26 }
 0xc0b   :  { %2417 = vmatprep.subr.bf16.mxu1 %v2612_v17 }
 0xcbd   :  { %v1115_v56 = vpop.f32.mrf.mxu1  ;;  %v1188_v9 = vpop.f32.mrf.mxu0 }
 0xcbe   :  { %v1128_v10 = vadd.f32 %v1115_v56, %v2788_v5  ;;  %v1121_v23 = vadd.f32 %v1115_v56, %v2784_v1  ;;  %v1189_v27 = vadd.f32 %v2872_v61, %v1188_v9 }
 0xcbf   :  { %v2375_v11 = vpop.f32.mrf.mxu1  ;;  %v2383_v12 = vpop.f32.mrf.mxu0 }
 0xcc0   :  { %1130 = vrot.lane.b32.xlu0 %v1128_v10, %s2614_s28  ;;  %v2126_v24 = vmul.f32 -1.442695, %v1121_v23 }
 0xcc1   :  { %v1118_v13 = vpop.f32.mrf.mxu1  ;;  %v1191_v14 = vpop.f32.mrf.mxu0 }
 0xcc2   :  { %2549 = vpow2.f32 %v2126_v24 }
 0xcc3   :  { %v2376_v15 = vpop.f32.mrf.mxu1  ;;  %v2384_v16 = vpop.f32.mrf.mxu0 }
 0xcc5   :  { %v1235_v18 = vpop.f32.mrf.mxu1 }
 0xcc6   :  { %v1248_v19 = vadd.f32 %v1235_v18, %v2864_v49  ;;  %v1241_v28 = vadd.f32 %v1235_v18, %v1189_v27 }
 0xcc7   :  { %v2391_v20 = vpop.f32.mrf.mxu1 }
 0xcc8   :  { %1250 = vrot.lane.b32.xlu1 %v1248_v19, %s2614_s28  ;;  %v2129_v29 = vmul.f32 -1.442695, %v1241_v28 }
 0xcc9   :  { %v1238_v21 = vpop.f32.mrf.mxu1 }
 0xcca   :  { %2551 = vpow2.f32 %v2129_v29 }
 0xccb   :  { %v2392_v22 = vpop.f32.mrf.mxu1 }
 0xccf   :  { %v2550_v31 = vpop.eup %2549 }
 0xcd0   :  { %v1125_v33 = vadd.f32 1.0, %v2550_v31 }
 0xcd2   :  { %2553 = vrcp.f32 %v1125_v33 }
 0xcd7   :  { %v2552_v34 = vpop.eup %2551 }
 0xcd8   :  { %v1245_v36 = vadd.f32 1.0, %v2552_v34 }
 0xcda   :  { %2555 = vrcp.f32 %v1245_v36 }
 0xcdf   :  { %v2554_v40 = vpop.eup %2553 }
 0xce0   :  { %v1140_v57 = vsub.f32 1.0, %v2554_v40  ;;  %v1146_v59 = vmul.f32 %v2554_v40, %v2997_v58 }
 0xce7   :  { %v2556_v46 = vpop.eup %2555 }
 0xce8   :  { %v1260_v8 = vsub.f32 1.0, %v2556_v46  ;;  %v1266_v56 = vmul.f32 %v2556_v46, %v3006_v4 }
 0xd32   :  { %v1131_v42 = vpop.permute.xlu0 %1130 }
 0xd33   :  { %v1133_v43 = vmul.f32 %v2554_v40, %v1131_v42 }
 0xd35   :  { %1135 = vrot.lane.b32.xlu0 %v1133_v43, %s2614_s28 }
 0xd39   :  { %1150 = vperm.xlu0 %2497, %v1148_v44  }
 0xd3a   :  { %v1251_v48 = vpop.permute.xlu1 %1250 }
 0xd3b   :  { %v1253_v35 = vmul.f32 %v2556_v46, %v1251_v48  ;;  %v1343_v48 = vsel %vm359_vm5, 1, %v2611_v0 }
 0xd3d   :  { %1255 = vrot.lane.b32.xlu1 %v1253_v35, %s2614_s28 }
 0xda7   :  { %v1136_v30 = vpop.permute.xlu0 %1135 }
 0xda8   :  { %v1138_v50 = vadd.f32 %v1136_v30, %v2784_v1 }
 0xdaa   :  { %2557 = vtanh.f32 %v1138_v50 }
 0xdaf   :  { %v1256_v51 = vpop.permute.xlu1 %1255 }
 0xdb0   :  { %v1258_v53 = vadd.f32 %v1256_v51, %v1189_v27 }
 0xdb2   :  { %2559 = vtanh.f32 %v1258_v53 }
 0xdb4   :  { %v3045_v47 = vpop.permute.xlu0 %1150 }
 0xdb5   :  { %vm1152_vm4 = vcmp.eq.s32.totalorder %v3045_v47, 1  ;;  %v2603_v47 = vld [vmem:[%s3274_s4 + $0x8] sm:$0xff]  }
 0xdb7   :  { %v2558_v54 = vpop.eup %2557 }
 0xdb8   :  { %1142 = vrot.lane.b32.xlu1 %v2558_v54, %s2615_s16 }
 0xdbf   :  { %v2560_v60 = vpop.eup %2559 }
 0xdc0   :  { %1262 = vrot.lane.b32.xlu0 %v2560_v60, %s2615_s16 }
 0xe2a   :  { %v1143_v32 = vpop.permute.xlu1 %1142 }
 0xe2b   :  { %v1145_v63 = vmul.f32 %v1143_v32, %v1140_v57 }
 0xe2d   :  { %v1147_v2 = vadd.f32 %v1146_v59, %v1145_v63 }
 0xe2f   :  { %v3052_v1 = vsel %vm1152_vm4, %v1147_v2, %v2997_v58 }
 0xe30   :  { %v1269_v55 = vpack.c.bf16 %v3052_v1, %v3052_v1 }
 0xe32   :  { %v1263_v45 = vpop.permute.xlu0 %1262  ;;  %1271 = vrot.lane.b32.xlu1 %v1269_v55, %s2615_s16 }
 0xe33   :  { %v1265_v9 = vmul.f32 %v1263_v45, %v1260_v8 }
 0xe35   :  { %v1267_v10 = vadd.f32 %v1266_v56, %v1265_v9 }
 0xe37   :  { %v3061_v11 = vsel %vm957_vm2, %v1267_v10, %v3006_v4 }
 0xe38   :  { %v1389_v58 = vpack.c.bf16 %v3061_v11, %v3061_v11 }
 0xe3a   :  { %1391 = vrot.lane.b32.xlu0 %v1389_v58, %s2615_s16 }
 0xea4   :  { %v1272_v12 = vpop.permute.xlu1 %1271 }
 0xea5   :  { %2398 = vmatmul.mubr.msk.bf16.vlgmr.msra.gmra.mxu0 %vm275_vm10, %v1272_v12  ;;  %2406 = vmatmul.mubr.msk.bf16.vlgmr.msra.gmra.mxu1 %vm275_vm10, %v1272_v12 }
 0xea6   :  { %2410 = vmatpush3.bf16.msra.mxu0 %v2834_v37  ;;  %2413 = vmatprep.mubr.msk.bf16.mxu0 %vm2613_vm9, %v2612_v17 }
 0xea7   :  { %2411 = vmatprep.subr.bf16.mxu0 %v2612_v17  ;;  %2418 = vmatpush3.bf16.msra.mxu1 %v2743_v38 }
 0xea8   :  { %2419 = vmatprep.subr.bf16.mxu1 %v2612_v17  ;;  %2421 = vmatprep.mubr.msk.bf16.mxu1 %vm2613_vm9, %v2612_v17 }
 0xeaa   :  { %2412 = vmatpush3.bf16.msra.mxu0 %v2842_v41 }
 0xeab   :  { %2425 = vmatprep.subr.bf16.mxu0 %v2612_v17  ;;  %2420 = vmatpush3.bf16.msra.mxu1 %v2750_v39 }
 0xeac   :  { %v1392_v52 = vpop.permute.xlu0 %1391  ;;  %2433 = vmatprep.subr.bf16.mxu1 %v2612_v17 }
 0xead   :  { %2414 = vmatmul.mubr.msk.bf16.vlgmr.msra.gmra.mxu0 %vm275_vm10, %v1392_v52 }
 0xeae   :  { %2426 = vmatpush3.bf16.msra.mxu0 %v2805_v25  ;;  %2429 = vmatprep.mubr.msk.bf16.mxu0 %vm2613_vm9, %v2612_v17 }
 0xeaf   :  { %2427 = vmatprep.subr.bf16.mxu0 %v2612_v17 }
 0xeb2   :  { %2428 = vmatpush3.bf16.msra.mxu0 %v2811_v26 }
 0xeb3   :  { %2441 = vmatprep.subr.bf16.mxu0 %v2612_v17 }
 0xf65   :  { %v1310_v38 = vpop.f32.mrf.mxu0  ;;  %v1383_v4 = vpop.f32.mrf.mxu1 }
 0xf66   :  { %v1323_v39 = vadd.f32 %v1310_v38, %v2788_v5  ;;  %v1316_v27 = vadd.f32 %v1310_v38, %v2795_v7  ;;  %v1384_v29 = vadd.f32 %v2872_v61, %v1383_v4 }
 0xf67   :  { %v2399_v13 = vpop.f32.mrf.mxu0  ;;  %v2407_v14 = vpop.f32.mrf.mxu1 }
 0xf68   :  { %1325 = vrot.lane.b32.xlu1 %v1323_v39, %s2614_s28  ;;  %v2131_v28 = vmul.f32 -1.442695, %v1316_v27 }
 0xf69   :  { %v1313_v15 = vpop.f32.mrf.mxu0  ;;  %v1386_v16 = vpop.f32.mrf.mxu1 }
 0xf6a   :  { %2561 = vpow2.f32 %v2131_v28 }
 0xf6b   :  { %v2400_v18 = vpop.f32.mrf.mxu0  ;;  %v2408_v19 = vpop.f32.mrf.mxu1 }
 0xf6d   :  { %v1430_v20 = vpop.f32.mrf.mxu0 }
 0xf6e   :  { %v1443_v21 = vadd.f32 %v1430_v20, %v2864_v49  ;;  %v1436_v31 = vadd.f32 %v1430_v20, %v1384_v29 }
 0xf6f   :  { %v2415_v22 = vpop.f32.mrf.mxu0 }
 0xf70   :  { %1445 = vrot.lane.b32.xlu0 %v1443_v21, %s2614_s28  ;;  %v2134_v33 = vmul.f32 -1.442695, %v1436_v31 }
 0xf71   :  { %v1433_v23 = vpop.f32.mrf.mxu0 }
 0xf72   :  { %2563 = vpow2.f32 %v2134_v33 }
 0xf73   :  { %v2416_v24 = vpop.f32.mrf.mxu0 }
 0xf77   :  { %v2562_v34 = vpop.eup %2561 }
 0xf78   :  { %v1320_v36 = vadd.f32 1.0, %v2562_v34 }
 0xf7a   :  { %2565 = vrcp.f32 %v1320_v36 }
 0xf7f   :  { %v2564_v40 = vpop.eup %2563 }
 0xf80   :  { %v1440_v42 = vadd.f32 1.0, %v2564_v40 }
 0xf82   :  { %2567 = vrcp.f32 %v1440_v42 }
 0xf87   :  { %v2566_v43 = vpop.eup %2565 }
 0xf88   :  { %v1335_v32 = vsub.f32 1.0, %v2566_v43  ;;  %v1341_v2 = vmul.f32 %v2566_v43, %v3052_v1 }
 0xf8f   :  { %v2568_v35 = vpop.eup %2567 }
 0xf90   :  { %v1455_v56 = vsub.f32 1.0, %v2568_v35  ;;  %v1461_v10 = vmul.f32 %v2568_v35, %v3061_v11 }
 0xfda   :  { %v1326_v44 = vpop.permute.xlu1 %1325 }
 0xfdb   :  { %v1328_v46 = vmul.f32 %v2566_v43, %v1326_v44  ;;  %v3155_v44 = vld [vmem:[%s3277_s1] sm:$0xff] }
 0xfdc   :  { %vm360_vm7 = vcmp.gt.s32.totalorder %v3155_v44, 6  ;;  %vm361_vm11 = vcmp.gt.s32.totalorder %v3155_v44, 7 }
 0xfdd   :  { %1330 = vrot.lane.b32.xlu1 %v1328_v46, %s2614_s28 }
 0xfe1   :  { %1345 = vperm.xlu1 %2498, %v1343_v48  }
 0xfe2   :  { %v1446_v30 = vpop.permute.xlu0 %1445 }
 0xfe3   :  { %v1448_v50 = vmul.f32 %v2568_v35, %v1446_v30 }
 0xfe5   :  { %1450 = vrot.lane.b32.xlu0 %v1448_v50, %s2614_s28 }
0x104f   :  { %v1331_v51 = vpop.permute.xlu1 %1330 }
0x1050   :  { %v1333_v53 = vadd.f32 %v1331_v51, %v2795_v7 }
0x1052   :  { %2569 = vtanh.f32 %v1333_v53 }
0x1057   :  { %v1451_v54 = vpop.permute.xlu0 %1450 }
0x1058   :  { %v1453_v60 = vadd.f32 %v1451_v54, %v1384_v29 }
0x105a   :  { %2571 = vtanh.f32 %v1453_v60 }
0x105c   :  { %v3100_v63 = vpop.permute.xlu1 %1345 }
0x105d   :  { %vm1347_vm6 = vcmp.eq.s32.totalorder %v3100_v63, 1  ;;  %v2607_v63 = vld [vmem:[%s3273_s3 + $0x18] sm:$0xff]  }
0x105f   :  { %v2570_v57 = vpop.eup %2569 }
0x1060   :  { %1337 = vrot.lane.b32.xlu0 %v2570_v57, %s2615_s16 }
0x1067   :  { %v2572_v6 = vpop.eup %2571 }
0x1068   :  { %1457 = vrot.lane.b32.xlu1 %v2572_v6, %s2615_s16 }
0x10d2   :  { %v1338_v59 = vpop.permute.xlu0 %1337 }
0x10d3   :  { %v1340_v55 = vmul.f32 %v1338_v59, %v1335_v32 }
0x10d5   :  { %v1342_v8 = vadd.f32 %v1341_v2, %v1340_v55 }
0x10d7   :  { %v3107_v7 = vsel %vm1347_vm6, %v1342_v8, %v3052_v1 }
0x10d8   :  { %v1464_v45 = vpack.c.bf16 %v3107_v7, %v3107_v7 }
0x10da   :  { %v1458_v9 = vpop.permute.xlu1 %1457  ;;  %1466 = vrot.lane.b32.xlu0 %v1464_v45, %s2615_s16 }
0x10db   :  { %v1460_v58 = vmul.f32 %v1458_v9, %v1455_v56 }
0x10dd   :  { %v1462_v12 = vadd.f32 %v1461_v10, %v1460_v58 }
0x10df   :  { %v3116_v52 = vsel %vm1152_vm4, %v1462_v12, %v3061_v11 }
0x10e0   :  { %v1584_v1 = vpack.c.bf16 %v3116_v52, %v3116_v52 }
0x10e2   :  { %1586 = vrot.lane.b32.xlu1 %v1584_v1, %s2615_s16 }
0x114c   :  { %v1467_v38 = vpop.permute.xlu0 %1466 }
0x114d   :  { %2422 = vmatmul.mubr.msk.bf16.vlgmr.msra.gmra.mxu1 %vm275_vm10, %v1467_v38  ;;  %2430 = vmatmul.mubr.msk.bf16.vlgmr.msra.gmra.mxu0 %vm275_vm10, %v1467_v38  ;;  %v2606_v38 = vld [vmem:[%s3274_s4 + $0x18] sm:$0xff]  }
0x114e   :  { %2434 = vmatpush3.bf16.msra.mxu1 %v2834_v37  ;;  %2437 = vmatprep.mubr.msk.bf16.mxu1 %vm2613_vm9, %v2612_v17  ;;  %v2604_v37 = vld [vmem:[%s3274_s4] sm:$0xff]  }
0x114f   :  { %2435 = vmatprep.subr.bf16.mxu1 %v2612_v17  ;;  %2442 = vmatpush3.bf16.msra.mxu0 %v2603_v47  ;;  %v2609_v47 = vld [vmem:[%s3273_s3 + $0x10] sm:$0xff]  }
0x1150   :  { %2443 = vmatprep.subr.bf16.mxu0 %v2612_v17  ;;  %2445 = vmatprep.mubr.msk.bf16.mxu0 %vm2613_vm9, %v2612_v17 }
0x1152   :  { %2436 = vmatpush3.bf16.msra.mxu1 %v2842_v41 }
0x1153   :  { %2449 = vmatprep.subr.bf16.mxu1 %v2612_v17  ;;  %2444 = vmatpush3.bf16.msra.mxu0 %v2604_v37 }
0x1154   :  { %v1587_v11 = vpop.permute.xlu1 %1586  ;;  %2457 = vmatprep.subr.bf16.mxu0 %v2612_v17 }
0x1155   :  { %2438 = vmatmul.mubr.msk.bf16.vlgmr.msra.gmra.mxu1 %vm275_vm10, %v1587_v11 }
0x1156   :  { %2450 = vmatpush3.bf16.msra.mxu1 %v2805_v25  ;;  %2453 = vmatprep.mubr.msk.bf16.mxu1 %vm2613_vm9, %v2612_v17 }
0x1157   :  { %2451 = vmatprep.subr.bf16.mxu1 %v2612_v17 }
0x115a   :  { %2452 = vmatpush3.bf16.msra.mxu1 %v2811_v26 }
0x115b   :  { %2465 = vmatprep.subr.bf16.mxu1 %v2612_v17 }
0x120d   :  { %v1505_v41 = vpop.f32.mrf.mxu1  ;;  %v1578_v4 = vpop.f32.mrf.mxu0 }
0x120e   :  { %v1518_v39 = vadd.f32 %v1505_v41, %v2788_v5  ;;  %v1511_v23 = vadd.f32 %v1505_v41, %v2782_v62  ;;  %v1579_v27 = vadd.f32 %v2872_v61, %v1578_v4  ;;  %v1538_v61 = vsel %vm360_vm7, 1, %v2611_v0 }
0x120f   :  { %v2423_v13 = vpop.f32.mrf.mxu1  ;;  %v2431_v14 = vpop.f32.mrf.mxu0 }
0x1210   :  { %1520 = vrot.lane.b32.xlu0 %v1518_v39, %s2614_s28  ;;  %v2136_v24 = vmul.f32 -1.442695, %v1511_v23 }
0x1211   :  { %v1508_v15 = vpop.f32.mrf.mxu1  ;;  %v1581_v16 = vpop.f32.mrf.mxu0 }
0x1212   :  { %2573 = vpow2.f32 %v2136_v24 }
0x1213   :  { %v2424_v25 = vpop.f32.mrf.mxu1  ;;  %v2432_v18 = vpop.f32.mrf.mxu0 }
0x1215   :  { %v1625_v19 = vpop.f32.mrf.mxu1 }
0x1216   :  { %v1638_v20 = vadd.f32 %v1625_v19, %v2864_v49  ;;  %v1631_v28 = vadd.f32 %v1625_v19, %v1579_v27 }
0x1217   :  { %v2439_v21 = vpop.f32.mrf.mxu1 }
0x1218   :  { %1640 = vrot.lane.b32.xlu1 %v1638_v20, %s2614_s28  ;;  %v2139_v29 = vmul.f32 -1.442695, %v1631_v28 }
0x1219   :  { %v1628_v26 = vpop.f32.mrf.mxu1 }
0x121a   :  { %2575 = vpow2.f32 %v2139_v29 }
0x121b   :  { %v2440_v22 = vpop.f32.mrf.mxu1 }
0x121f   :  { %v2574_v31 = vpop.eup %2573 }
0x1220   :  { %v1515_v33 = vadd.f32 1.0, %v2574_v31 }
0x1222   :  { %2577 = vrcp.f32 %v1515_v33 }
0x1227   :  { %v2576_v34 = vpop.eup %2575 }
0x1228   :  { %v1635_v36 = vadd.f32 1.0, %v2576_v34 }
0x122a   :  { %2579 = vrcp.f32 %v1635_v36 }
0x122f   :  { %v2578_v40 = vpop.eup %2577 }
0x1230   :  { %v1530_v57 = vsub.f32 1.0, %v2578_v40  ;;  %v1536_v59 = vmul.f32 %v2578_v40, %v3107_v7 }
0x1237   :  { %v2580_v46 = vpop.eup %2579 }
0x1238   :  { %v1650_v45 = vsub.f32 1.0, %v2580_v46  ;;  %v1656_v9 = vmul.f32 %v2580_v46, %v3116_v52 }
0x1282   :  { %v1521_v42 = vpop.permute.xlu0 %1520 }
0x1283   :  { %v1523_v43 = vmul.f32 %v2578_v40, %v1521_v42 }
0x1285   :  { %1525 = vrot.lane.b32.xlu0 %v1523_v43, %s2614_s28  ;;  %v1733_v43 = vsel %vm361_vm11, 1, %v2611_v0 }
0x1289   :  { %1540 = vperm.xlu0 %2497, %v1538_v61  }
0x128a   :  { %v1641_v48 = vpop.permute.xlu1 %1640 }
0x128b   :  { %v1643_v35 = vmul.f32 %v2580_v46, %v1641_v48 }
0x128d   :  { %1645 = vrot.lane.b32.xlu1 %v1643_v35, %s2614_s28 }
0x12f7   :  { %v1526_v30 = vpop.permute.xlu0 %1525 }
0x12f8   :  { %v1528_v50 = vadd.f32 %v1526_v30, %v2782_v62 }
0x12fa   :  { %2581 = vtanh.f32 %v1528_v50 }
0x12ff   :  { %v1646_v51 = vpop.permute.xlu1 %1645 }
0x1300   :  { %v1648_v53 = vadd.f32 %v1646_v51, %v1579_v27 }
0x1302   :  { %2583 = vtanh.f32 %v1648_v53 }
0x1304   :  { %v3164_v32 = vpop.permute.xlu0 %1540 }
0x1305   :  { %vm1542_vm8 = vcmp.eq.s32.totalorder %v3164_v32, 1 }
0x1307   :  { %v2582_v54 = vpop.eup %2581 }
0x1308   :  { %1532 = vrot.lane.b32.xlu1 %v2582_v54, %s2615_s16 }
0x130f   :  { %v2584_v60 = vpop.eup %2583 }
0x1310   :  { %1652 = vrot.lane.b32.xlu0 %v2584_v60, %s2615_s16 }
0x137a   :  { %v1533_v6 = vpop.permute.xlu1 %1532 }
0x137b   :  { %v1535_v2 = vmul.f32 %v1533_v6, %v1530_v57 }
0x137d   :  { %v1537_v55 = vadd.f32 %v1536_v59, %v1535_v2 }
0x137f   :  { %v3171_v62 = vsel %vm1542_vm8, %v1537_v55, %v3107_v7 }
0x1380   :  { %v1659_v8 = vpack.c.bf16 %v3171_v62, %v3171_v62 }
0x1382   :  { %v1653_v56 = vpop.permute.xlu0 %1652  ;;  %1661 = vrot.lane.b32.xlu1 %v1659_v8, %s2615_s16 }
0x1383   :  { %v1655_v10 = vmul.f32 %v1653_v56, %v1650_v45 }
0x1385   :  { %v1657_v58 = vadd.f32 %v1656_v9, %v1655_v10 }
0x1387   :  { %v3180_v12 = vsel %vm1347_vm6, %v1657_v58, %v3116_v52  ;;  %v2608_v52 = vld [vmem:[%s3274_s4 + $0x10] sm:$0xff]  }
0x1388   :  { %v1779_v7 = vpack.c.bf16 %v3180_v12, %v3180_v12 }
0x138a   :  { %1781 = vrot.lane.b32.xlu0 %v1779_v7, %s2615_s16 }
0x13f4   :  { %v1662_v1 = vpop.permute.xlu1 %1661 }
0x13f5   :  { %2446 = vmatmul.mubr.msk.bf16.vlgmr.msra.gmra.mxu0 %vm275_vm10, %v1662_v1  ;;  %2454 = vmatmul.mubr.msk.bf16.vlgmr.msra.gmra.mxu1 %vm275_vm10, %v1662_v1 }
0x13f6   :  { %2458 = vmatpush3.bf16.msra.mxu0 %v2606_v38  ;;  %2461 = vmatprep.mubr.msk.bf16.mxu0 %vm2613_vm9, %v2612_v17 }
0x13f7   :  { %2459 = vmatprep.subr.bf16.mxu0 %v2612_v17  ;;  %2466 = vmatpush3.bf16.msra.mxu1 %v2607_v63 }
0x13f8   :  { %2467 = vmatprep.subr.bf16.mxu1 %v2612_v17  ;;  %2469 = vmatprep.mubr.msk.bf16.mxu1 %vm2613_vm9, %v2612_v17 }
0x13fa   :  { %2460 = vmatpush3.bf16.msra.mxu0 %v2608_v52 }
0x13fb   :  { %2473 = vmatprep.subr.bf16.mxu0 %v2612_v17  ;;  %2468 = vmatpush3.bf16.msra.mxu1 %v2609_v47 }
0x13fc   :  { %v1782_v37 = vpop.permute.xlu0 %1781  ;;  %2481 = vmatprep.subr.mxu1 %v2612_v17 }
0x13fd   :  { %2462 = vmatmul.mubr.msk.bf16.vlgmr.msra.gmra.mxu0 %vm275_vm10, %v1782_v37 }
0x13fe   :  { %2474 = vmatpush3.bf16.msra.mxu0 %v2606_v38  ;;  %2477 = vmatprep.mubr.msk.bf16.mxu0 %vm2613_vm9, %v2612_v17 }
0x13ff   :  { %2475 = vmatprep.subr.bf16.mxu0 %v2612_v17 }
0x1402   :  { %2476 = vmatpush3.bf16.msra.mxu0 %v2608_v52 }
0x14b5   :  { %v1700_v11 = vpop.f32.mrf.mxu0  ;;  %v1773_v41 = vpop.f32.mrf.mxu1 }
0x14b6   :  { %v1713_v4 = vadd.f32 %v1700_v11, %v2788_v5  ;;  %v1706_v22 = vadd.f32 %v1700_v11, %v2786_v3  ;;  %v3219_v5 = vld [vmem:[%s3276_s5 + $0x1] ss:$0 sm:$0xff] }
0x14b7   :  { %v2447_v39 = vpop.f32.mrf.mxu0  ;;  %v2455_v13 = vpop.f32.mrf.mxu1  ;;  %v1774_v24 = vadd.f32 %v3219_v5, %v1773_v41 }
0x14b8   :  { %1715 = vrot.lane.b32.xlu0 %v1713_v4, %s2614_s28  ;;  %v2141_v23 = vmul.f32 -1.442695, %v1706_v22 }
0x14b9   :  { %v1703_v14 = vpop.f32.mrf.mxu0  ;;  %v1776_v15 = vpop.f32.mrf.mxu1 }
0x14ba   :  { %2585 = vpow2.f32 %v2141_v23 }
0x14bb   :  { %v2448_v16 = vpop.f32.mrf.mxu0  ;;  %v2456_v25 = vpop.f32.mrf.mxu1 }
0x14bd   :  { %v1820_v18 = vpop.f32.mrf.mxu0 }
0x14be   :  { %v1833_v19 = vadd.f32 %v1820_v18, %v2864_v49  ;;  %v1826_v27 = vadd.f32 %v1820_v18, %v1774_v24 }
0x14bf   :  { %v2463_v20 = vpop.f32.mrf.mxu0 }
0x14c0   :  { %1835 = vrot.lane.b32.xlu1 %v1833_v19, %s2614_s28  ;;  %v2144_v28 = vmul.f32 -1.442695, %v1826_v27  ;;  %v1979_v19 = vld [vmem:[%s3278_s7 + $0x18] sm:$0xff]  ;;  %v1978_v20 = vld [vmem:[%s3278_s7 + $0x10] sm:$0xff] }
0x14c1   :  { %v1823_v21 = vpop.f32.mrf.mxu0 }
0x14c2   :  { %2587 = vpow2.f32 %v2144_v28  ;;  %v1977_v21 = vld [vmem:[%s3278_s7 + $0x8] sm:$0xff] }
0x14c3   :  { %v2464_v26 = vpop.f32.mrf.mxu0 }
0x14c4   :  { %v1976_v26 = vld [vmem:[%s3278_s7] sm:$0xff] }
0x14c7   :  { %v2586_v29 = vpop.eup %2585 }
0x14c8   :  { %v1710_v31 = vadd.f32 1.0, %v2586_v29 }
0x14ca   :  { %2589 = vrcp.f32 %v1710_v31 }
0x14cf   :  { %v2588_v33 = vpop.eup %2587 }
0x14d0   :  { %v1830_v34 = vadd.f32 1.0, %v2588_v33  ;;  %v2148_v33 = vld [vmem:[%s3279_s8] ss:$0 sm:$0xff] }
0x14d2   :  { %2591 = vrcp.f32 %v1830_v34 }
0x14d7   :  { %v2590_v36 = vpop.eup %2589 }
0x14d8   :  { %v1725_v59 = vsub.f32 1.0, %v2590_v36  ;;  %v1731_v8 = vmul.f32 %v2590_v36, %v3171_v62 }
0x14df   :  { %v2592_v61 = vpop.eup %2591 }
0x14e0   :  { %v1845_v0 = vsub.f32 1.0, %v2592_v61  ;;  %v1851_v60 = vmul.f32 %v2592_v61, %v3180_v12 }
0x152a   :  { %v1716_v40 = vpop.permute.xlu0 %1715 }
0x152b   :  { %v1718_v42 = vmul.f32 %v2590_v36, %v1716_v40 }
0x152d   :  { %1720 = vrot.lane.b32.xlu0 %v1718_v42, %s2614_s28 }
0x1531   :  { %1735 = vperm.xlu0 %2497, %v1733_v43  }
0x1532   :  { %v1836_v46 = vpop.permute.xlu1 %1835 }
0x1533   :  { %v1838_v48 = vmul.f32 %v2592_v61, %v1836_v46 }
0x1535   :  { %1840 = vrot.lane.b32.xlu1 %v1838_v48, %s2614_s28 }
0x159f   :  { %v1721_v35 = vpop.permute.xlu0 %1720 }
0x15a0   :  { %v1723_v51 = vadd.f32 %v1721_v35, %v2786_v3 }
0x15a7   :  { %v1841_v30 = vpop.permute.xlu1 %1840 }
0x15a8   :  { %v1843_v50 = vadd.f32 %v1841_v30, %v1774_v24 }
0x15aa   :  { %2593 = vtanh.f32 %v1843_v50 }
0x15ab   :  { %2595 = vtanh.f32 %v1723_v51 }
0x15ac   :  { %v1736_v55 = vpop.permute.xlu0 %1735 }
0x15ad   :  { %vm1737_vm12 = vcmp.eq.s32.totalorder %v1736_v55, 1 }
0x15b7   :  { %v2594_v53 = vpop.eup %2593 }
0x15b8   :  { %1847 = vrot.lane.b32.xlu1 %v2594_v53, %s2615_s16  ;;  %v2596_v44 = vpop.eup %2595 }
0x15bc   :  { %1727 = vrot.lane.b32.xlu1 %v2596_v44, %s2615_s16 }
0x162a   :  { %v1848_v54 = vpop.permute.xlu1 %1847 }
0x162b   :  { %v1850_v57 = vmul.f32 %v1848_v54, %v1845_v0 }
0x162d   :  { %v1852_v6 = vadd.f32 %v1851_v60, %v1850_v57 }
0x162e   :  { %v1728_v2 = vpop.permute.xlu1 %1727 }
0x162f   :  { %v1730_v3 = vmul.f32 %v1728_v2, %v1725_v59  ;;  %v1853_v45 = vsel %vm1542_vm8, %v1852_v6, %v3180_v12 }
0x1630   :  { %v1901_v56 = vpack.c.bf16 %v1853_v45, %v1853_v45 }
0x1631   :  { %v1732_v9 = vadd.f32 %v1731_v8, %v1730_v3 }
0x1632   :  { %1903 = vrot.lane.b32.xlu0 %v1901_v56, %s2615_s16 }
0x1633   :  { %v1738_v10 = vsel %vm1737_vm12, %v1732_v9, %v3171_v62 }
0x1634   :  { %v1854_v58 = vpack.c.bf16 %v1738_v10, %v1738_v10 }
0x1636   :  { %1856 = vrot.lane.b32.xlu1 %v1854_v58, %s2615_s16 }
0x16a4   :  { %v1904_v7 = vpop.permute.xlu0 %1903 }
0x16a5   :  { %2478 = vmatmul.mubr.msk.bf16.vlgmr.msra.gmra.mxu0 %vm275_vm10, %v1904_v7 }
0x16a8   :  { %v1857_v1 = vpop.permute.xlu1 %1856 }
0x16a9   :  { %2470 = vmatmul.mubr.msk.bf16.vlgmr.msra.gmra.mxu1 %vm275_vm10, %v1857_v1 }
0x16aa   :  { %2489 = vmatprep.mubr.msk.f32.mxu1 %vm2613_vm9, %v2612_v17  ;;  %2482 = vmatpush3.msra.mxu1 %v1979_v19  ;;  %vm2062_vm9 = vcmask 31744  }
0x16ab   :  { %2483 = vmatprep.subr.mxu1 %v2612_v17 }
0x16ac   :  { %2484 = vmatpush3.msra.mxu1 %v1978_v20 }
0x16ad   :  { %2485 = vmatprep.subr.mxu1 %v2612_v17 }
0x16ae   :  { %2486 = vmatpush3.msra.mxu1 %v1977_v21 }
0x16af   :  { %2487 = vmatprep.subr.mxu1 %v2612_v17 }
0x16b0   :  { %2488 = vmatpush3.msra.mxu1 %v1976_v26 }
0x1765   :  { %v1942_v32 = vpop.f32.mrf.mxu0 }
0x1766   :  { %v1955_v12 = vadd.f32 %v1942_v32, %v2864_v49 }
0x1767   :  { %v2479_v38 = vpop.f32.mrf.mxu0 }
0x1768   :  { %1957 = vrot.lane.b32.xlu0 %v1955_v12, %s2614_s28 }
0x1769   :  { %v1895_v63 = vpop.f32.mrf.mxu1  ;;  %v1945_v62 = vpop.f32.mrf.mxu0 }
0x176a   :  { %v1896_v41 = vadd.f32 %v3219_v5, %v1895_v63 }
0x176b   :  { %v2471_v52 = vpop.f32.mrf.mxu1  ;;  %v2480_v47 = vpop.f32.mrf.mxu0 }
0x176c   :  { %v1948_v4 = vadd.f32 %v1942_v32, %v1896_v41 }
0x176d   :  { %v1898_v37 = vpop.f32.mrf.mxu1 }
0x176e   :  { %v2147_v39 = vmul.f32 -1.442695, %v1948_v4 }
0x176f   :  { %v2472_v11 = vpop.f32.mrf.mxu1 }
0x1770   :  { %2597 = vpow2.f32 %v2147_v39 }
0x177d   :  { %v2598_v13 = vpop.eup %2597 }
0x177e   :  { %v1952_v14 = vadd.f32 1.0, %v2598_v13 }
0x1780   :  { %2599 = vrcp.f32 %v1952_v14 }
0x178d   :  { %v2600_v15 = vpop.eup %2599 }
0x178e   :  { %v1967_v23 = vsub.f32 1.0, %v2600_v15  ;;  %v1973_v24 = vmul.f32 %v2600_v15, %v1853_v45 }
0x17da   :  { %v1958_v16 = vpop.permute.xlu0 %1957 }
0x17db   :  { %v1960_v49 = vmul.f32 %v2600_v15, %v1958_v16 }
0x17dd   :  { %1962 = vrot.lane.b32.xlu1 %v1960_v49, %s2614_s28 }
0x184f   :  { %v1963_v25 = vpop.permute.xlu1 %1962 }
0x1850   :  { %v1965_v18 = vadd.f32 %v1963_v25, %v1896_v41 }
0x1852   :  { %2601 = vtanh.f32 %v1965_v18 }
0x185f   :  { %v2602_v22 = vpop.eup %2601 }
0x1860   :  { %1969 = vrot.lane.b32.xlu0 %v2602_v22, %s2615_s16 }
0x18d2   :  { %v1970_v5 = vpop.permute.xlu0 %1969 }
0x18d3   :  { %v1972_v27 = vmul.f32 %v1970_v5, %v1967_v23 }
0x18d5   :  { %v1974_v28 = vadd.f32 %v1973_v24, %v1972_v27 }
0x18d7   :  { %v1975_v29 = vsel %vm1737_vm12, %v1974_v28, %v1853_v45 }
0x18d8   :  { %1988 = vrot.lane.b32.xlu1 %v1975_v29, %s2615_s16 }
0x194a   :  { %v1989_v31 = vpop.permute.xlu1 %1988 }
0x194b   :  { %2490 = vmatmul.mubr.msk.f32.vlgmr.msra.gmra.mxu1 %vm275_vm10, %v1989_v31 }
0x1a0b   :  { %v2058_v17 = vpop.f32.mrf.mxu1 }
0x1a0c   :  { %v2059_v34 = vadd.f32 %v2148_v33, %v2058_v17 }
0x1a0d   :  { %v2491_v36 = vpop.f32.mrf.mxu1 }
0x1a0e   :  { %2063 = vst.msk [vmem:[%s3280_s9] sm:$0xff] %vm2062_vm9, %v2059_v34 }

</bundles_post_ra>
